<compile_context>
chip_gen: v6e
topology: v6e:2x2x1
jax: 0.10.0
libtpu: 0.0.40
codegen_flags: <defaults>
</compile_context>

<pallas_src>
import functools

import jax
import jax.numpy as jnp
from jax import lax
from jax.experimental import pallas as pl
from jax.experimental.pallas import tpu as pltpu


# ----------------------------- in-kernel math helpers -----------------------------

def _layernorm(x, gamma, beta, eps):
    mean = jnp.mean(x, axis=-1, keepdims=True)
    var = jnp.mean((x - mean) ** 2, axis=-1, keepdims=True)
    return (x - mean) * lax.rsqrt(var + eps) * gamma + beta


def _erf_approx(x):
    # Abramowitz & Stegun 7.1.26, |err| <= 1.5e-7 (only exp/mul/add -> Mosaic-safe)
    a1, a2, a3, a4, a5 = 0.254829592, -0.284496736, 1.421413741, -1.453152027, 1.061405429
    p = 0.3275911
    ax = jnp.abs(x)
    t = 1.0 / (1.0 + p * ax)
    poly = ((((a5 * t + a4) * t + a3) * t + a2) * t + a1) * t
    y = 1.0 - poly * jnp.exp(-ax * ax)
    return jnp.where(x >= 0, y, -y)


def _gelu(x):
    # exact (erf-based) GELU, matching torch.nn.GELU()
    return 0.5 * x * (1.0 + _erf_approx(x * 0.7071067811865476))


# ----------------------------------- fused kernel ----------------------------------

def bert4rec_fused_kernel(
        x_ref, posemb_ref, mask_ref, hvec_ref,
        wqkv_ref, bqkv_ref, wo_ref, lvec_ref,
        w1_ref, b1_ref, w2_ref, ow_ref, pn_ref,
        out_ref,
        *, n_layers, n_heads, eps):
    # one batch element per grid step: (S, H) activations stay in VMEM/vregs
    hv = hvec_ref[...]                                         # (8, H) packed head vectors
    x = x_ref[0] + posemb_ref[...]                             # (S, H) f32
    x = _layernorm(x, hv[0:1], hv[1:2], eps)                   # embedding LayerNorm
    mask = mask_ref[0]                                         # (1, S) additive key mask

    H = x.shape[-1]
    dh = H // n_heads
    scale = 1.0 / float(dh) ** 0.5
    wdt = wqkv_ref.dtype                                       # bf16 MXU operands

    for l in range(n_layers):                                  # static layer loop, weights resident
        lv = lvec_ref[l]                                       # (8, H) packed per-layer vectors
        # fused QKV projection: (S, H) @ (H, 3H) -> (S, 3H), f32 accumulation
        qkv = jnp.dot(x.astype(wdt), wqkv_ref[l],
                      preferred_element_type=jnp.float32) + bqkv_ref[l]

        ctx_parts = []
        for h in range(n_heads):                               # static unrolled head loop
            qh = qkv[:, h * dh:(h + 1) * dh]
            kh = qkv[:, H + h * dh:H + (h + 1) * dh]
            vh = qkv[:, 2 * H + h * dh:2 * H + (h + 1) * dh]
            s = jnp.dot(qh, kh.T, preferred_element_type=jnp.float32) * scale + mask
            s = s - jnp.max(s, axis=-1, keepdims=True)
            p = jnp.exp(s)
            p = p * pl.reciprocal(jnp.sum(p, axis=-1, keepdims=True), approx=True)
            ctx_parts.append(jnp.dot(p, vh, preferred_element_type=jnp.float32))
        ctx = jnp.concatenate(ctx_parts, axis=-1)              # (S, H)

        attn = jnp.dot(ctx.astype(wdt), wo_ref[l],
                       preferred_element_type=jnp.float32) + lv[0:1]
        x = _layernorm(attn + x, lv[1:2], lv[2:3], eps)

        hdn = _gelu(jnp.dot(x.astype(wdt), w1_ref[l],
                            preferred_element_type=jnp.float32) + b1_ref[l])
        ffn = jnp.dot(hdn.astype(wdt), w2_ref[l],
                      preferred_element_type=jnp.float32) + lv[3:4]
        x = _layernorm(ffn + x, lv[4:5], lv[5:6], eps)

    # output head: FFN + GELU + LayerNorm
    feats = _gelu(jnp.dot(x.astype(wdt), ow_ref[...],
                          preferred_element_type=jnp.float32) + hv[2:3])
    feats = _layernorm(feats, hv[3:4], hv[4:5], eps)

    # pos/neg pair logits fused in: (feats * emb).sum(-1), stored as one (2, S) block
    out_ref[0] = jnp.sum(feats[None, :, :] * pn_ref[0], axis=-1)


# ------------------------------- pallas_call wrapper --------------------------------

def bert4rec_fused_call(fp, item_x, pos_emb, mask, pn_embs, *, n_layers, n_heads, eps):
    B, S, H = item_x.shape
    inner = fp["w1"].shape[-1]
    L = n_layers

    def full(shape):
        n = len(shape)
        return pl.BlockSpec(shape, lambda b, _n=n: (0,) * _n)

    out = pl.pallas_call(
        functools.partial(bert4rec_fused_kernel,
                          n_layers=n_layers, n_heads=n_heads, eps=eps),
        out_shape=jax.ShapeDtypeStruct((B, 2, S), jnp.float32),
        grid=(B,),
        in_specs=[
            pl.BlockSpec((1, S, H), lambda b: (b, 0, 0)),        # item embedding (B,S,H)
            full((S, H)),                                        # positional embedding
            pl.BlockSpec((1, 1, S), lambda b: (b, 0, 0)),        # additive key mask
            full((8, H)),                                        # packed head vectors
            full((L, H, 3 * H)), full((L, 1, 3 * H)),            # fused Wqkv, bqkv
            full((L, H, H)),                                     # Wo
            full((L, 8, H)),                                     # packed per-layer vectors
            full((L, H, inner)), full((L, 1, inner)),            # W1, b1
            full((L, inner, H)),                                 # W2
            full((H, H)),                                        # output FFN W
            pl.BlockSpec((1, 2, S, H), lambda b: (b, 0, 0, 0)),  # pos/neg item embeddings
        ],
        out_specs=pl.BlockSpec((1, 2, S), lambda b: (b, 0, 0)),
        compiler_params=pltpu.CompilerParams(dimension_semantics=("parallel",)),
    )(item_x, pos_emb, mask, fp["hvec"],
      fp["wqkv"], fp["bqkv"], fp["wo"], fp["lvec"],
      fp["w1"], fp["b1"], fp["w2"], fp["out_w"], pn_embs)

    return out[:, 0, :], out[:, 1, :]


# ------------------------------- parameter preparation ------------------------------

def prepare_fused_params(params, weight_dtype=jnp.bfloat16):
    """Stack per-layer weights along a leading axis, fuse Q|K|V, pack all small
    bias / LayerNorm vectors into two slabs, cast weight matrices to bf16."""
    layers = params["layers"]
    H = params["item_emb"].shape[1]
    stack = lambda key: jnp.stack([lp[key] for lp in layers])
    zrow = jnp.zeros((1, H), jnp.float32)
    vrow = lambda a: a.reshape(1, H).astype(jnp.float32)

    lvec = jnp.stack([
        jnp.concatenate([vrow(lp["bo"]), vrow(lp["ln1_g"]), vrow(lp["ln1_b"]),
                         vrow(lp["b2"]), vrow(lp["ln2_g"]), vrow(lp["ln2_b"]),
                         zrow, zrow], axis=0)
        for lp in layers])                                      # (L, 8, H)

    hvec = jnp.concatenate([
        vrow(params["emb_ln_g"]), vrow(params["emb_ln_b"]),
        vrow(params["out_b"]), vrow(params["out_ln_g"]), vrow(params["out_ln_b"]),
        zrow, zrow, zrow], axis=0)                              # (8, H)

    return {
        "wqkv": jnp.stack([jnp.concatenate([lp["wq"], lp["wk"], lp["wv"]], axis=1)
                           for lp in layers]).astype(weight_dtype),
        "bqkv": jnp.stack([jnp.concatenate([lp["bq"], lp["bk"], lp["bv"]], axis=1)
                           for lp in layers]).astype(jnp.float32),
        "wo": stack("wo").astype(weight_dtype),
        "w1": stack("w1").astype(weight_dtype), "b1": stack("b1").astype(jnp.float32),
        "w2": stack("w2").astype(weight_dtype),
        "lvec": lvec, "hvec": hvec,
        "out_w": params["out_w"].astype(weight_dtype),
    }


# --------------------------------- model forward ------------------------------------

def bert4rec_forward(params, fused, user_ids, log_seqs, pos_seqs, neg_seqs,
                     *, n_layers, n_heads, eps):
    del user_ids  # unused, matching the PyTorch forward
    B, S = log_seqs.shape

    # embedding gathers + mask construction (glue, plain JAX)
    item_x = params["item_emb"][log_seqs]                               # (B, S, H)
    pos_emb = params["pos_emb"][:S]                                     # (S, H)
    mask = jnp.where(log_seqs != 0, 0.0, -10000.0).astype(jnp.float32)[:, None, :]
    pn_embs = jnp.stack([params["item_emb"][pos_seqs],
                         params["item_emb"][neg_seqs]], axis=1)         # (B, 2, S, H)

    return bert4rec_fused_call(fused, item_x, pos_emb, mask, pn_embs,
                               n_layers=n_layers, n_heads=n_heads, eps=eps)


# ---------------------------- deterministic param init ------------------------------

def make_params(key, n_items, hidden, inner, n_layers, maxlen):
    keys = iter(jax.random.split(key, 8 + 12 * n_layers))

    def nrm(shape, scale=0.05):
        return (scale * jax.random.normal(next(keys), shape)).astype(jnp.float32)

    xavier_std = (2.0 / (n_items + 1 + hidden)) ** 0.5
    item_w = xavier_std * jax.random.normal(next(keys), (n_items + 1, hidden))
    item_w = item_w.at[0].set(0.0)                       # padding_idx = 0
    params = {
        "item_emb": item_w.astype(jnp.float32),
        "pos_emb": jax.random.normal(next(keys), (maxlen, hidden)).astype(jnp.float32),
        "emb_ln_g": jnp.ones((1, hidden), jnp.float32),
        "emb_ln_b": jnp.zeros((1, hidden), jnp.float32),
        "out_w": nrm((hidden, hidden)),
        "out_b": nrm((1, hidden)),
        "out_ln_g": jnp.ones((1, hidden), jnp.float32),
        "out_ln_b": jnp.zeros((1, hidden), jnp.float32),
    }
    layers = []
    for _ in range(n_layers):
        layers.append(dict(
            wq=nrm((hidden, hidden)), bq=nrm((1, hidden)),
            wk=nrm((hidden, hidden)), bk=nrm((1, hidden)),
            wv=nrm((hidden, hidden)), bv=nrm((1, hidden)),
            wo=nrm((hidden, hidden)), bo=nrm((1, hidden)),
            ln1_g=jnp.ones((1, hidden), jnp.float32), ln1_b=jnp.zeros((1, hidden), jnp.float32),
            w1=nrm((hidden, inner)), b1=nrm((1, inner)),
            w2=nrm((inner, hidden)), b2=nrm((1, hidden)),
            ln2_g=jnp.ones((1, hidden), jnp.float32), ln2_b=jnp.zeros((1, hidden), jnp.float32),
        ))
    params["layers"] = layers
    return params


# ------------------------------ pure-JAX reference -----------------------------------

def reference_forward(params, log_seqs, pos_seqs, neg_seqs, *, n_heads, eps):
    def ln(x, g, b):
        m = jnp.mean(x, -1, keepdims=True)
        v = jnp.mean((x - m) ** 2, -1, keepdims=True)
        return (x - m) / jnp.sqrt(v + eps) * g + b

    B, S = log_seqs.shape
    x = params["item_emb"][log_seqs] + params["pos_emb"][None, :S]
    x = ln(x, params["emb_ln_g"][0], params["emb_ln_b"][0])
    H = x.shape[-1]
    dh = H // n_heads
    mask = jnp.where(log_seqs != 0, 0.0, -10000.0)[:, None, None, :]

    for lp in params["layers"]:
        q = x @ lp["wq"] + lp["bq"][0]
        k = x @ lp["wk"] + lp["bk"][0]
        v = x @ lp["wv"] + lp["bv"][0]
        split = lambda t: t.reshape(B, S, n_heads, dh).transpose(0, 2, 1, 3)
        qh, kh, vh = split(q), split(k), split(v)
        s = jnp.einsum("bhqd,bhkd->bhqk", qh, kh) / jnp.sqrt(float(dh)) + mask
        p = jax.nn.softmax(s, axis=-1)
        ctx = jnp.einsum("bhqk,bhkd->bhqd", p, vh).transpose(0, 2, 1, 3).reshape(B, S, H)
        attn = ctx @ lp["wo"] + lp["bo"][0]
        x = ln(attn + x, lp["ln1_g"][0], lp["ln1_b"][0])
        h1 = jax.nn.gelu(x @ lp["w1"] + lp["b1"][0], approximate=False)
        ffn = h1 @ lp["w2"] + lp["b2"][0]
        x = ln(ffn + x, lp["ln2_g"][0], lp["ln2_b"][0])

    feats = ln(jax.nn.gelu(x @ params["out_w"] + params["out_b"][0], approximate=False),
               params["out_ln_g"][0], params["out_ln_b"][0])
    pos = jnp.sum(feats * params["item_emb"][pos_seqs], -1)
    neg = jnp.sum(feats * params["item_emb"][neg_seqs], -1)
    return pos, neg


# ------------------------------------- main -------------------------------------------

if __name__ == "__main__":
    # config (small, consistent with the module)
    N_LAYERS, N_HEADS, HIDDEN, INNER = 2, 2, 32, 64
    EPS = 1e-12
    B, S, N_ITEMS = 2, 8, 100

    key = jax.random.PRNGKey(0)
    pkey, dkey = jax.random.split(key)
    params = make_params(pkey, N_ITEMS, HIDDEN, INNER, N_LAYERS, S)
    fused = prepare_fused_params(params)       # one-time weight stacking / QKV fusion / bf16 cast

    k1, k2, k3 = jax.random.split(dkey, 3)
    user_ids = jnp.arange(B, dtype=jnp.int32)
    log_seqs = jax.random.randint(k1, (B, S), 1, N_ITEMS + 1)
    log_seqs = log_seqs.at[0, :2].set(0)        # padding positions exercise the mask
    pos_seqs = jax.random.randint(k2, (B, S), 1, N_ITEMS + 1)
    neg_seqs = jax.random.randint(k3, (B, S), 1, N_ITEMS + 1)

    # TODO(synk): dropout layers are inference-mode identities; output_bias is unused in forward().
    fwd = jax.jit(functools.partial(bert4rec_forward,
                                    n_layers=N_LAYERS, n_heads=N_HEADS, eps=EPS))
    pos_logits, neg_logits = fwd(params, fused, user_ids, log_seqs, pos_seqs, neg_seqs)
    jax.block_until_ready((pos_logits, neg_logits))

    ref_pos, ref_neg = reference_forward(
        params, log_seqs, pos_seqs, neg_seqs, n_heads=N_HEADS, eps=EPS)
    assert pos_logits.shape == (B, S) and neg_logits.shape == (B, S)
    assert bool(jnp.allclose(pos_logits, ref_pos, atol=2e-2, rtol=2e-2))
    assert bool(jnp.allclose(neg_logits, ref_neg, atol=2e-2, rtol=2e-2))

    print("KERNEL_OK")
</pallas_src>

<mosaic_0001>
module attributes {stable_mosaic.version = 11 : i64} {
  func.func @bert4rec_fused_kernel(%arg0: i32, %arg1: memref<1x8x32xf32, #tpu.memory_space<vmem>>, %arg2: memref<8x32xf32, #tpu.memory_space<vmem>>, %arg3: memref<1x1x8xf32, #tpu.memory_space<vmem>>, %arg4: memref<8x32xf32, #tpu.memory_space<vmem>>, %arg5: memref<2x32x96xbf16, #tpu.memory_space<vmem>>, %arg6: memref<2x1x96xf32, #tpu.memory_space<vmem>>, %arg7: memref<2x32x32xbf16, #tpu.memory_space<vmem>>, %arg8: memref<2x8x32xf32, #tpu.memory_space<vmem>>, %arg9: memref<2x32x64xbf16, #tpu.memory_space<vmem>>, %arg10: memref<2x1x64xf32, #tpu.memory_space<vmem>>, %arg11: memref<2x64x32xbf16, #tpu.memory_space<vmem>>, %arg12: memref<32x32xbf16, #tpu.memory_space<vmem>>, %arg13: memref<1x2x8x32xf32, #tpu.memory_space<vmem>>, %arg14: memref<1x2x8xf32, #tpu.memory_space<vmem>>) attributes {dimension_semantics = [#tpu.dimension_semantics<parallel>], iteration_bounds = array<i64: 2>, scalar_prefetch = 0 : i64, scratch_operands = 0 : i64, tpu.core_type = #tpu.core_type<tc>, window_params = [{transform_indices = @transform_0, window_bounds = array<i64: 1, 8, 32>}, {pipeline_mode = #tpu.pipeline_mode<synchronous>, transform_indices = @transform_1, window_bounds = array<i64: 8, 32>}, {transform_indices = @transform_2, window_bounds = array<i64: 1, 1, 8>}, {pipeline_mode = #tpu.pipeline_mode<synchronous>, transform_indices = @transform_3, window_bounds = array<i64: 8, 32>}, {pipeline_mode = #tpu.pipeline_mode<synchronous>, transform_indices = @transform_4, window_bounds = array<i64: 2, 32, 96>}, {pipeline_mode = #tpu.pipeline_mode<synchronous>, transform_indices = @transform_5, window_bounds = array<i64: 2, 1, 96>}, {pipeline_mode = #tpu.pipeline_mode<synchronous>, transform_indices = @transform_6, window_bounds = array<i64: 2, 32, 32>}, {pipeline_mode = #tpu.pipeline_mode<synchronous>, transform_indices = @transform_7, window_bounds = array<i64: 2, 8, 32>}, {pipeline_mode = #tpu.pipeline_mode<synchronous>, transform_indices = @transform_8, window_bounds = array<i64: 2, 32, 64>}, {pipeline_mode = #tpu.pipeline_mode<synchronous>, transform_indices = @transform_9, window_bounds = array<i64: 2, 1, 64>}, {pipeline_mode = #tpu.pipeline_mode<synchronous>, transform_indices = @transform_10, window_bounds = array<i64: 2, 64, 32>}, {pipeline_mode = #tpu.pipeline_mode<synchronous>, transform_indices = @transform_11, window_bounds = array<i64: 32, 32>}, {transform_indices = @transform_12, window_bounds = array<i64: 1, 2, 8, 32>}, {transform_indices = @transform_13, window_bounds = array<i64: 1, 2, 8>}]} {
    %c0 = arith.constant 0 : index
    %c0_0 = arith.constant 0 : index
    %0 = vector.load %arg4[%c0, %c0_0] : memref<8x32xf32, #tpu.memory_space<vmem>>, vector<8x32xf32>
    %c0_1 = arith.constant 0 : index
    %c0_2 = arith.constant 0 : index
    %c0_3 = arith.constant 0 : index
    %1 = vector.load %arg1[%c0_1, %c0_2, %c0_3] : memref<1x8x32xf32, #tpu.memory_space<vmem>>, vector<1x8x32xf32>
    %2 = vector.shape_cast %1 : vector<1x8x32xf32> to vector<8x32xf32>
    %c0_4 = arith.constant 0 : index
    %c0_5 = arith.constant 0 : index
    %3 = vector.load %arg2[%c0_4, %c0_5] : memref<8x32xf32, #tpu.memory_space<vmem>>, vector<8x32xf32>
    %4 = arith.addf %2, %3 : vector<8x32xf32>
    %5 = vector.extract_strided_slice %0 {offsets = [0, 0], sizes = [1, 32], strides = [1, 1]} : vector<8x32xf32> to vector<1x32xf32>
    %6 = vector.extract_strided_slice %0 {offsets = [1, 0], sizes = [1, 32], strides = [1, 1]} : vector<8x32xf32> to vector<1x32xf32>
    %cst = arith.constant dense<0.000000e+00> : vector<8xf32>
    %7 = vector.multi_reduction <add>, %4, %cst [1] : vector<8x32xf32> to vector<8xf32>
    %8 = vector.shape_cast %7 : vector<8xf32> to vector<8x1xf32>
    %cst_6 = arith.constant 3.200000e+01 : f32
    %9 = vector.broadcast %cst_6 : f32 to vector<8x1xf32>
    %10 = arith.divf %8, %9 : vector<8x1xf32>
    %11 = vector.broadcast %10 : vector<8x1xf32> to vector<8x32xf32>
    %12 = arith.subf %4, %11 : vector<8x32xf32>
    %13 = arith.mulf %12, %12 : vector<8x32xf32>
    %cst_7 = arith.constant dense<0.000000e+00> : vector<8xf32>
    %14 = vector.multi_reduction <add>, %13, %cst_7 [1] : vector<8x32xf32> to vector<8xf32>
    %15 = vector.shape_cast %14 : vector<8xf32> to vector<8x1xf32>
    %cst_8 = arith.constant 3.200000e+01 : f32
    %16 = vector.broadcast %cst_8 : f32 to vector<8x1xf32>
    %17 = arith.divf %15, %16 : vector<8x1xf32>
    %18 = vector.broadcast %10 : vector<8x1xf32> to vector<8x32xf32>
    %19 = arith.subf %4, %18 : vector<8x32xf32>
    %cst_9 = arith.constant 9.99999996E-13 : f32
    %20 = vector.broadcast %cst_9 : f32 to vector<8x1xf32>
    %21 = arith.addf %17, %20 : vector<8x1xf32>
    %22 = math.rsqrt %21 : vector<8x1xf32>
    %23 = vector.broadcast %22 : vector<8x1xf32> to vector<8x32xf32>
    %24 = arith.mulf %19, %23 : vector<8x32xf32>
    %25 = vector.broadcast %5 : vector<1x32xf32> to vector<8x32xf32>
    %26 = arith.mulf %24, %25 : vector<8x32xf32>
    %27 = vector.broadcast %6 : vector<1x32xf32> to vector<8x32xf32>
    %28 = arith.addf %26, %27 : vector<8x32xf32>
    %c0_10 = arith.constant 0 : index
    %c0_11 = arith.constant 0 : index
    %c0_12 = arith.constant 0 : index
    %29 = vector.load %arg3[%c0_10, %c0_11, %c0_12] : memref<1x1x8xf32, #tpu.memory_space<vmem>>, vector<1x1x8xf32>
    %30 = vector.shape_cast %29 : vector<1x1x8xf32> to vector<1x8xf32>
    %c0_13 = arith.constant 0 : index
    %c0_14 = arith.constant 0 : index
    %c0_15 = arith.constant 0 : index
    %31 = vector.load %arg8[%c0_13, %c0_14, %c0_15] : memref<2x8x32xf32, #tpu.memory_space<vmem>>, vector<1x8x32xf32>
    %32 = vector.shape_cast %31 : vector<1x8x32xf32> to vector<8x32xf32>
    %33 = arith.truncf %28 : vector<8x32xf32> to vector<8x32xbf16>
    %c0_16 = arith.constant 0 : index
    %c0_17 = arith.constant 0 : index
    %c0_18 = arith.constant 0 : index
    %34 = vector.load %arg5[%c0_16, %c0_17, %c0_18] : memref<2x32x96xbf16, #tpu.memory_space<vmem>>, vector<1x32x96xbf16>
    %35 = vector.shape_cast %34 : vector<1x32x96xbf16> to vector<32x96xbf16>
    %cst_19 = arith.constant dense<0.000000e+00> : vector<8x96xf32>
    %36 = tpu.matmul %33, %35, %cst_19 {dimension_numbers = #tpu.dot_dimension_numbers<[1], [0], [0], [1], [0, 0, 1, 1], [], []>} : vector<8x32xbf16>, vector<32x96xbf16>, vector<8x96xf32> -> vector<8x96xf32>
    %c0_20 = arith.constant 0 : index
    %c0_21 = arith.constant 0 : index
    %c0_22 = arith.constant 0 : index
    %37 = vector.load %arg6[%c0_20, %c0_21, %c0_22] : memref<2x1x96xf32, #tpu.memory_space<vmem>>, vector<1x1x96xf32>
    %38 = vector.shape_cast %37 : vector<1x1x96xf32> to vector<1x96xf32>
    %39 = vector.broadcast %38 : vector<1x96xf32> to vector<8x96xf32>
    %40 = arith.addf %36, %39 : vector<8x96xf32>
    %41 = vector.extract_strided_slice %40 {offsets = [0, 0], sizes = [8, 16], strides = [1, 1]} : vector<8x96xf32> to vector<8x16xf32>
    %42 = vector.extract_strided_slice %40 {offsets = [0, 32], sizes = [8, 16], strides = [1, 1]} : vector<8x96xf32> to vector<8x16xf32>
    %43 = vector.extract_strided_slice %40 {offsets = [0, 64], sizes = [8, 16], strides = [1, 1]} : vector<8x96xf32> to vector<8x16xf32>
    %44 = tpu.transpose %42, [1, 0] : vector<8x16xf32> -> vector<16x8xf32>
    %cst_23 = arith.constant dense<0.000000e+00> : vector<8x8xf32>
    %45 = tpu.matmul %41, %44, %cst_23 {dimension_numbers = #tpu.dot_dimension_numbers<[1], [0], [0], [1], [0, 0, 1, 1], [], []>} : vector<8x16xf32>, vector<16x8xf32>, vector<8x8xf32> -> vector<8x8xf32>
    %cst_24 = arith.constant 2.500000e-01 : f32
    %46 = vector.broadcast %cst_24 : f32 to vector<8x8xf32>
    %47 = arith.mulf %45, %46 : vector<8x8xf32>
    %48 = vector.broadcast %30 : vector<1x8xf32> to vector<8x8xf32>
    %49 = arith.addf %47, %48 : vector<8x8xf32>
    %cst_25 = arith.constant dense<0xFF800000> : vector<8xf32>
    %50 = vector.multi_reduction <maximumf>, %49, %cst_25 [1] : vector<8x8xf32> to vector<8xf32>
    %51 = vector.shape_cast %50 : vector<8xf32> to vector<8x1xf32>
    %52 = vector.broadcast %51 : vector<8x1xf32> to vector<8x8xf32>
    %53 = arith.subf %49, %52 : vector<8x8xf32>
    %54 = math.exp %53 : vector<8x8xf32>
    %cst_26 = arith.constant dense<0.000000e+00> : vector<8xf32>
    %55 = vector.multi_reduction <add>, %54, %cst_26 [1] : vector<8x8xf32> to vector<8xf32>
    %56 = vector.shape_cast %55 : vector<8xf32> to vector<8x1xf32>
    %57 = tpu.reciprocal %56 {approx = true} : vector<8x1xf32> -> vector<8x1xf32>
    %58 = vector.broadcast %57 : vector<8x1xf32> to vector<8x8xf32>
    %59 = arith.mulf %54, %58 : vector<8x8xf32>
    %cst_27 = arith.constant dense<0.000000e+00> : vector<8x16xf32>
    %60 = tpu.matmul %59, %43, %cst_27 {dimension_numbers = #tpu.dot_dimension_numbers<[1], [0], [0], [1], [0, 0, 1, 1], [], []>} : vector<8x8xf32>, vector<8x16xf32>, vector<8x16xf32> -> vector<8x16xf32>
    %61 = vector.extract_strided_slice %40 {offsets = [0, 16], sizes = [8, 16], strides = [1, 1]} : vector<8x96xf32> to vector<8x16xf32>
    %62 = vector.extract_strided_slice %40 {offsets = [0, 48], sizes = [8, 16], strides = [1, 1]} : vector<8x96xf32> to vector<8x16xf32>
    %63 = vector.extract_strided_slice %40 {offsets = [0, 80], sizes = [8, 16], strides = [1, 1]} : vector<8x96xf32> to vector<8x16xf32>
    %64 = tpu.transpose %62, [1, 0] : vector<8x16xf32> -> vector<16x8xf32>
    %cst_28 = arith.constant dense<0.000000e+00> : vector<8x8xf32>
    %65 = tpu.matmul %61, %64, %cst_28 {dimension_numbers = #tpu.dot_dimension_numbers<[1], [0], [0], [1], [0, 0, 1, 1], [], []>} : vector<8x16xf32>, vector<16x8xf32>, vector<8x8xf32> -> vector<8x8xf32>
    %cst_29 = arith.constant 2.500000e-01 : f32
    %66 = vector.broadcast %cst_29 : f32 to vector<8x8xf32>
    %67 = arith.mulf %65, %66 : vector<8x8xf32>
    %68 = vector.broadcast %30 : vector<1x8xf32> to vector<8x8xf32>
    %69 = arith.addf %67, %68 : vector<8x8xf32>
    %cst_30 = arith.constant dense<0xFF800000> : vector<8xf32>
    %70 = vector.multi_reduction <maximumf>, %69, %cst_30 [1] : vector<8x8xf32> to vector<8xf32>
    %71 = vector.shape_cast %70 : vector<8xf32> to vector<8x1xf32>
    %72 = vector.broadcast %71 : vector<8x1xf32> to vector<8x8xf32>
    %73 = arith.subf %69, %72 : vector<8x8xf32>
    %74 = math.exp %73 : vector<8x8xf32>
    %cst_31 = arith.constant dense<0.000000e+00> : vector<8xf32>
    %75 = vector.multi_reduction <add>, %74, %cst_31 [1] : vector<8x8xf32> to vector<8xf32>
    %76 = vector.shape_cast %75 : vector<8xf32> to vector<8x1xf32>
    %77 = tpu.reciprocal %76 {approx = true} : vector<8x1xf32> -> vector<8x1xf32>
    %78 = vector.broadcast %77 : vector<8x1xf32> to vector<8x8xf32>
    %79 = arith.mulf %74, %78 : vector<8x8xf32>
    %cst_32 = arith.constant dense<0.000000e+00> : vector<8x16xf32>
    %80 = tpu.matmul %79, %63, %cst_32 {dimension_numbers = #tpu.dot_dimension_numbers<[1], [0], [0], [1], [0, 0, 1, 1], [], []>} : vector<8x8xf32>, vector<8x16xf32>, vector<8x16xf32> -> vector<8x16xf32>
    %81 = tpu.concatenate %60, %80 in 1 : vector<8x16xf32>, vector<8x16xf32> -> vector<8x32xf32>
    %82 = arith.truncf %81 : vector<8x32xf32> to vector<8x32xbf16>
    %c0_33 = arith.constant 0 : index
    %c0_34 = arith.constant 0 : index
    %c0_35 = arith.constant 0 : index
    %83 = vector.load %arg7[%c0_33, %c0_34, %c0_35] : memref<2x32x32xbf16, #tpu.memory_space<vmem>>, vector<1x32x32xbf16>
    %84 = vector.shape_cast %83 : vector<1x32x32xbf16> to vector<32x32xbf16>
    %cst_36 = arith.constant dense<0.000000e+00> : vector<8x32xf32>
    %85 = tpu.matmul %82, %84, %cst_36 {dimension_numbers = #tpu.dot_dimension_numbers<[1], [0], [0], [1], [0, 0, 1, 1], [], []>} : vector<8x32xbf16>, vector<32x32xbf16>, vector<8x32xf32> -> vector<8x32xf32>
    %86 = vector.extract_strided_slice %32 {offsets = [0, 0], sizes = [1, 32], strides = [1, 1]} : vector<8x32xf32> to vector<1x32xf32>
    %87 = vector.broadcast %86 : vector<1x32xf32> to vector<8x32xf32>
    %88 = arith.addf %85, %87 : vector<8x32xf32>
    %89 = arith.addf %88, %28 : vector<8x32xf32>
    %90 = vector.extract_strided_slice %32 {offsets = [1, 0], sizes = [1, 32], strides = [1, 1]} : vector<8x32xf32> to vector<1x32xf32>
    %91 = vector.extract_strided_slice %32 {offsets = [2, 0], sizes = [1, 32], strides = [1, 1]} : vector<8x32xf32> to vector<1x32xf32>
    %cst_37 = arith.constant dense<0.000000e+00> : vector<8xf32>
    %92 = vector.multi_reduction <add>, %89, %cst_37 [1] : vector<8x32xf32> to vector<8xf32>
    %93 = vector.shape_cast %92 : vector<8xf32> to vector<8x1xf32>
    %cst_38 = arith.constant 3.200000e+01 : f32
    %94 = vector.broadcast %cst_38 : f32 to vector<8x1xf32>
    %95 = arith.divf %93, %94 : vector<8x1xf32>
    %96 = vector.broadcast %95 : vector<8x1xf32> to vector<8x32xf32>
    %97 = arith.subf %89, %96 : vector<8x32xf32>
    %98 = arith.mulf %97, %97 : vector<8x32xf32>
    %cst_39 = arith.constant dense<0.000000e+00> : vector<8xf32>
    %99 = vector.multi_reduction <add>, %98, %cst_39 [1] : vector<8x32xf32> to vector<8xf32>
    %100 = vector.shape_cast %99 : vector<8xf32> to vector<8x1xf32>
    %cst_40 = arith.constant 3.200000e+01 : f32
    %101 = vector.broadcast %cst_40 : f32 to vector<8x1xf32>
    %102 = arith.divf %100, %101 : vector<8x1xf32>
    %103 = vector.broadcast %95 : vector<8x1xf32> to vector<8x32xf32>
    %104 = arith.subf %89, %103 : vector<8x32xf32>
    %cst_41 = arith.constant 9.99999996E-13 : f32
    %105 = vector.broadcast %cst_41 : f32 to vector<8x1xf32>
    %106 = arith.addf %102, %105 : vector<8x1xf32>
    %107 = math.rsqrt %106 : vector<8x1xf32>
    %108 = vector.broadcast %107 : vector<8x1xf32> to vector<8x32xf32>
    %109 = arith.mulf %104, %108 : vector<8x32xf32>
    %110 = vector.broadcast %90 : vector<1x32xf32> to vector<8x32xf32>
    %111 = arith.mulf %109, %110 : vector<8x32xf32>
    %112 = vector.broadcast %91 : vector<1x32xf32> to vector<8x32xf32>
    %113 = arith.addf %111, %112 : vector<8x32xf32>
    %114 = arith.truncf %113 : vector<8x32xf32> to vector<8x32xbf16>
    %c0_42 = arith.constant 0 : index
    %c0_43 = arith.constant 0 : index
    %c0_44 = arith.constant 0 : index
    %115 = vector.load %arg9[%c0_42, %c0_43, %c0_44] : memref<2x32x64xbf16, #tpu.memory_space<vmem>>, vector<1x32x64xbf16>
    %116 = vector.shape_cast %115 : vector<1x32x64xbf16> to vector<32x64xbf16>
    %cst_45 = arith.constant dense<0.000000e+00> : vector<8x64xf32>
    %117 = tpu.matmul %114, %116, %cst_45 {dimension_numbers = #tpu.dot_dimension_numbers<[1], [0], [0], [1], [0, 0, 1, 1], [], []>} : vector<8x32xbf16>, vector<32x64xbf16>, vector<8x64xf32> -> vector<8x64xf32>
    %c0_46 = arith.constant 0 : index
    %c0_47 = arith.constant 0 : index
    %c0_48 = arith.constant 0 : index
    %118 = vector.load %arg10[%c0_46, %c0_47, %c0_48] : memref<2x1x64xf32, #tpu.memory_space<vmem>>, vector<1x1x64xf32>
    %119 = vector.shape_cast %118 : vector<1x1x64xf32> to vector<1x64xf32>
    %120 = vector.broadcast %119 : vector<1x64xf32> to vector<8x64xf32>
    %121 = arith.addf %117, %120 : vector<8x64xf32>
    %cst_49 = arith.constant 5.000000e-01 : f32
    %122 = vector.broadcast %cst_49 : f32 to vector<8x64xf32>
    %123 = arith.mulf %122, %121 : vector<8x64xf32>
    %cst_50 = arith.constant 0.707106769 : f32
    %124 = vector.broadcast %cst_50 : f32 to vector<8x64xf32>
    %125 = arith.mulf %121, %124 : vector<8x64xf32>
    %126 = math.absf %125 : vector<8x64xf32>
    %cst_51 = arith.constant 0.327591091 : f32
    %127 = vector.broadcast %cst_51 : f32 to vector<8x64xf32>
    %128 = arith.mulf %127, %126 : vector<8x64xf32>
    %cst_52 = arith.constant 1.000000e+00 : f32
    %129 = vector.broadcast %cst_52 : f32 to vector<8x64xf32>
    %130 = arith.addf %129, %128 : vector<8x64xf32>
    %cst_53 = arith.constant 1.000000e+00 : f32
    %131 = vector.broadcast %cst_53 : f32 to vector<8x64xf32>
    %132 = arith.divf %131, %130 : vector<8x64xf32>
    %cst_54 = arith.constant 1.06140542 : f32
    %133 = vector.broadcast %cst_54 : f32 to vector<8x64xf32>
    %134 = arith.mulf %133, %132 : vector<8x64xf32>
    %cst_55 = arith.constant -1.45315206 : f32
    %135 = vector.broadcast %cst_55 : f32 to vector<8x64xf32>
    %136 = arith.addf %134, %135 : vector<8x64xf32>
    %137 = arith.mulf %136, %132 : vector<8x64xf32>
    %cst_56 = arith.constant 1.42141378 : f32
    %138 = vector.broadcast %cst_56 : f32 to vector<8x64xf32>
    %139 = arith.addf %137, %138 : vector<8x64xf32>
    %140 = arith.mulf %139, %132 : vector<8x64xf32>
    %cst_57 = arith.constant -0.284496725 : f32
    %141 = vector.broadcast %cst_57 : f32 to vector<8x64xf32>
    %142 = arith.addf %140, %141 : vector<8x64xf32>
    %143 = arith.mulf %142, %132 : vector<8x64xf32>
    %cst_58 = arith.constant 0.254829586 : f32
    %144 = vector.broadcast %cst_58 : f32 to vector<8x64xf32>
    %145 = arith.addf %143, %144 : vector<8x64xf32>
    %146 = arith.mulf %145, %132 : vector<8x64xf32>
    %cst_59 = arith.constant 0.000000e+00 : f32
    %147 = vector.broadcast %cst_59 : f32 to vector<8x64xf32>
    %148 = arith.subf %147, %126 : vector<8x64xf32>
    %149 = arith.mulf %148, %126 : vector<8x64xf32>
    %150 = math.exp %149 : vector<8x64xf32>
    %151 = arith.mulf %146, %150 : vector<8x64xf32>
    %cst_60 = arith.constant 1.000000e+00 : f32
    %152 = vector.broadcast %cst_60 : f32 to vector<8x64xf32>
    %153 = arith.subf %152, %151 : vector<8x64xf32>
    %cst_61 = arith.constant 0.000000e+00 : f32
    %154 = vector.broadcast %cst_61 : f32 to vector<8x64xf32>
    %155 = arith.cmpf oge, %125, %154 : vector<8x64xf32>
    %cst_62 = arith.constant 0.000000e+00 : f32
    %156 = vector.broadcast %cst_62 : f32 to vector<8x64xf32>
    %157 = arith.subf %156, %153 : vector<8x64xf32>
    %158 = arith.select %155, %153, %157 : vector<8x64xi1>, vector<8x64xf32>
    %cst_63 = arith.constant 1.000000e+00 : f32
    %159 = vector.broadcast %cst_63 : f32 to vector<8x64xf32>
    %160 = arith.addf %159, %158 : vector<8x64xf32>
    %161 = arith.mulf %123, %160 : vector<8x64xf32>
    %162 = arith.truncf %161 : vector<8x64xf32> to vector<8x64xbf16>
    %c0_64 = arith.constant 0 : index
    %c0_65 = arith.constant 0 : index
    %c0_66 = arith.constant 0 : index
    %163 = vector.load %arg11[%c0_64, %c0_65, %c0_66] : memref<2x64x32xbf16, #tpu.memory_space<vmem>>, vector<1x64x32xbf16>
    %164 = vector.shape_cast %163 : vector<1x64x32xbf16> to vector<64x32xbf16>
    %cst_67 = arith.constant dense<0.000000e+00> : vector<8x32xf32>
    %165 = tpu.matmul %162, %164, %cst_67 {dimension_numbers = #tpu.dot_dimension_numbers<[1], [0], [0], [1], [0, 0, 1, 1], [], []>} : vector<8x64xbf16>, vector<64x32xbf16>, vector<8x32xf32> -> vector<8x32xf32>
    %166 = vector.extract_strided_slice %32 {offsets = [3, 0], sizes = [1, 32], strides = [1, 1]} : vector<8x32xf32> to vector<1x32xf32>
    %167 = vector.broadcast %166 : vector<1x32xf32> to vector<8x32xf32>
    %168 = arith.addf %165, %167 : vector<8x32xf32>
    %169 = arith.addf %168, %113 : vector<8x32xf32>
    %170 = vector.extract_strided_slice %32 {offsets = [4, 0], sizes = [1, 32], strides = [1, 1]} : vector<8x32xf32> to vector<1x32xf32>
    %171 = vector.extract_strided_slice %32 {offsets = [5, 0], sizes = [1, 32], strides = [1, 1]} : vector<8x32xf32> to vector<1x32xf32>
    %cst_68 = arith.constant dense<0.000000e+00> : vector<8xf32>
    %172 = vector.multi_reduction <add>, %169, %cst_68 [1] : vector<8x32xf32> to vector<8xf32>
    %173 = vector.shape_cast %172 : vector<8xf32> to vector<8x1xf32>
    %cst_69 = arith.constant 3.200000e+01 : f32
    %174 = vector.broadcast %cst_69 : f32 to vector<8x1xf32>
    %175 = arith.divf %173, %174 : vector<8x1xf32>
    %176 = vector.broadcast %175 : vector<8x1xf32> to vector<8x32xf32>
    %177 = arith.subf %169, %176 : vector<8x32xf32>
    %178 = arith.mulf %177, %177 : vector<8x32xf32>
    %cst_70 = arith.constant dense<0.000000e+00> : vector<8xf32>
    %179 = vector.multi_reduction <add>, %178, %cst_70 [1] : vector<8x32xf32> to vector<8xf32>
    %180 = vector.shape_cast %179 : vector<8xf32> to vector<8x1xf32>
    %cst_71 = arith.constant 3.200000e+01 : f32
    %181 = vector.broadcast %cst_71 : f32 to vector<8x1xf32>
    %182 = arith.divf %180, %181 : vector<8x1xf32>
    %183 = vector.broadcast %175 : vector<8x1xf32> to vector<8x32xf32>
    %184 = arith.subf %169, %183 : vector<8x32xf32>
    %cst_72 = arith.constant 9.99999996E-13 : f32
    %185 = vector.broadcast %cst_72 : f32 to vector<8x1xf32>
    %186 = arith.addf %182, %185 : vector<8x1xf32>
    %187 = math.rsqrt %186 : vector<8x1xf32>
    %188 = vector.broadcast %187 : vector<8x1xf32> to vector<8x32xf32>
    %189 = arith.mulf %184, %188 : vector<8x32xf32>
    %190 = vector.broadcast %170 : vector<1x32xf32> to vector<8x32xf32>
    %191 = arith.mulf %189, %190 : vector<8x32xf32>
    %192 = vector.broadcast %171 : vector<1x32xf32> to vector<8x32xf32>
    %193 = arith.addf %191, %192 : vector<8x32xf32>
    %c1 = arith.constant 1 : index
    %c0_73 = arith.constant 0 : index
    %c0_74 = arith.constant 0 : index
    %194 = vector.load %arg8[%c1, %c0_73, %c0_74] : memref<2x8x32xf32, #tpu.memory_space<vmem>>, vector<1x8x32xf32>
    %195 = vector.shape_cast %194 : vector<1x8x32xf32> to vector<8x32xf32>
    %196 = arith.truncf %193 : vector<8x32xf32> to vector<8x32xbf16>
    %c1_75 = arith.constant 1 : index
    %c0_76 = arith.constant 0 : index
    %c0_77 = arith.constant 0 : index
    %197 = vector.load %arg5[%c1_75, %c0_76, %c0_77] : memref<2x32x96xbf16, #tpu.memory_space<vmem>>, vector<1x32x96xbf16>
    %198 = vector.shape_cast %197 : vector<1x32x96xbf16> to vector<32x96xbf16>
    %cst_78 = arith.constant dense<0.000000e+00> : vector<8x96xf32>
    %199 = tpu.matmul %196, %198, %cst_78 {dimension_numbers = #tpu.dot_dimension_numbers<[1], [0], [0], [1], [0, 0, 1, 1], [], []>} : vector<8x32xbf16>, vector<32x96xbf16>, vector<8x96xf32> -> vector<8x96xf32>
    %c1_79 = arith.constant 1 : index
    %c0_80 = arith.constant 0 : index
    %c0_81 = arith.constant 0 : index
    %200 = vector.load %arg6[%c1_79, %c0_80, %c0_81] : memref<2x1x96xf32, #tpu.memory_space<vmem>>, vector<1x1x96xf32>
    %201 = vector.shape_cast %200 : vector<1x1x96xf32> to vector<1x96xf32>
    %202 = vector.broadcast %201 : vector<1x96xf32> to vector<8x96xf32>
    %203 = arith.addf %199, %202 : vector<8x96xf32>
    %204 = vector.extract_strided_slice %203 {offsets = [0, 0], sizes = [8, 16], strides = [1, 1]} : vector<8x96xf32> to vector<8x16xf32>
    %205 = vector.extract_strided_slice %203 {offsets = [0, 32], sizes = [8, 16], strides = [1, 1]} : vector<8x96xf32> to vector<8x16xf32>
    %206 = vector.extract_strided_slice %203 {offsets = [0, 64], sizes = [8, 16], strides = [1, 1]} : vector<8x96xf32> to vector<8x16xf32>
    %207 = tpu.transpose %205, [1, 0] : vector<8x16xf32> -> vector<16x8xf32>
    %cst_82 = arith.constant dense<0.000000e+00> : vector<8x8xf32>
    %208 = tpu.matmul %204, %207, %cst_82 {dimension_numbers = #tpu.dot_dimension_numbers<[1], [0], [0], [1], [0, 0, 1, 1], [], []>} : vector<8x16xf32>, vector<16x8xf32>, vector<8x8xf32> -> vector<8x8xf32>
    %cst_83 = arith.constant 2.500000e-01 : f32
    %209 = vector.broadcast %cst_83 : f32 to vector<8x8xf32>
    %210 = arith.mulf %208, %209 : vector<8x8xf32>
    %211 = vector.broadcast %30 : vector<1x8xf32> to vector<8x8xf32>
    %212 = arith.addf %210, %211 : vector<8x8xf32>
    %cst_84 = arith.constant dense<0xFF800000> : vector<8xf32>
    %213 = vector.multi_reduction <maximumf>, %212, %cst_84 [1] : vector<8x8xf32> to vector<8xf32>
    %214 = vector.shape_cast %213 : vector<8xf32> to vector<8x1xf32>
    %215 = vector.broadcast %214 : vector<8x1xf32> to vector<8x8xf32>
    %216 = arith.subf %212, %215 : vector<8x8xf32>
    %217 = math.exp %216 : vector<8x8xf32>
    %cst_85 = arith.constant dense<0.000000e+00> : vector<8xf32>
    %218 = vector.multi_reduction <add>, %217, %cst_85 [1] : vector<8x8xf32> to vector<8xf32>
    %219 = vector.shape_cast %218 : vector<8xf32> to vector<8x1xf32>
    %220 = tpu.reciprocal %219 {approx = true} : vector<8x1xf32> -> vector<8x1xf32>
    %221 = vector.broadcast %220 : vector<8x1xf32> to vector<8x8xf32>
    %222 = arith.mulf %217, %221 : vector<8x8xf32>
    %cst_86 = arith.constant dense<0.000000e+00> : vector<8x16xf32>
    %223 = tpu.matmul %222, %206, %cst_86 {dimension_numbers = #tpu.dot_dimension_numbers<[1], [0], [0], [1], [0, 0, 1, 1], [], []>} : vector<8x8xf32>, vector<8x16xf32>, vector<8x16xf32> -> vector<8x16xf32>
    %224 = vector.extract_strided_slice %203 {offsets = [0, 16], sizes = [8, 16], strides = [1, 1]} : vector<8x96xf32> to vector<8x16xf32>
    %225 = vector.extract_strided_slice %203 {offsets = [0, 48], sizes = [8, 16], strides = [1, 1]} : vector<8x96xf32> to vector<8x16xf32>
    %226 = vector.extract_strided_slice %203 {offsets = [0, 80], sizes = [8, 16], strides = [1, 1]} : vector<8x96xf32> to vector<8x16xf32>
    %227 = tpu.transpose %225, [1, 0] : vector<8x16xf32> -> vector<16x8xf32>
    %cst_87 = arith.constant dense<0.000000e+00> : vector<8x8xf32>
    %228 = tpu.matmul %224, %227, %cst_87 {dimension_numbers = #tpu.dot_dimension_numbers<[1], [0], [0], [1], [0, 0, 1, 1], [], []>} : vector<8x16xf32>, vector<16x8xf32>, vector<8x8xf32> -> vector<8x8xf32>
    %cst_88 = arith.constant 2.500000e-01 : f32
    %229 = vector.broadcast %cst_88 : f32 to vector<8x8xf32>
    %230 = arith.mulf %228, %229 : vector<8x8xf32>
    %231 = vector.broadcast %30 : vector<1x8xf32> to vector<8x8xf32>
    %232 = arith.addf %230, %231 : vector<8x8xf32>
    %cst_89 = arith.constant dense<0xFF800000> : vector<8xf32>
    %233 = vector.multi_reduction <maximumf>, %232, %cst_89 [1] : vector<8x8xf32> to vector<8xf32>
    %234 = vector.shape_cast %233 : vector<8xf32> to vector<8x1xf32>
    %235 = vector.broadcast %234 : vector<8x1xf32> to vector<8x8xf32>
    %236 = arith.subf %232, %235 : vector<8x8xf32>
    %237 = math.exp %236 : vector<8x8xf32>
    %cst_90 = arith.constant dense<0.000000e+00> : vector<8xf32>
    %238 = vector.multi_reduction <add>, %237, %cst_90 [1] : vector<8x8xf32> to vector<8xf32>
    %239 = vector.shape_cast %238 : vector<8xf32> to vector<8x1xf32>
    %240 = tpu.reciprocal %239 {approx = true} : vector<8x1xf32> -> vector<8x1xf32>
    %241 = vector.broadcast %240 : vector<8x1xf32> to vector<8x8xf32>
    %242 = arith.mulf %237, %241 : vector<8x8xf32>
    %cst_91 = arith.constant dense<0.000000e+00> : vector<8x16xf32>
    %243 = tpu.matmul %242, %226, %cst_91 {dimension_numbers = #tpu.dot_dimension_numbers<[1], [0], [0], [1], [0, 0, 1, 1], [], []>} : vector<8x8xf32>, vector<8x16xf32>, vector<8x16xf32> -> vector<8x16xf32>
    %244 = tpu.concatenate %223, %243 in 1 : vector<8x16xf32>, vector<8x16xf32> -> vector<8x32xf32>
    %245 = arith.truncf %244 : vector<8x32xf32> to vector<8x32xbf16>
    %c1_92 = arith.constant 1 : index
    %c0_93 = arith.constant 0 : index
    %c0_94 = arith.constant 0 : index
    %246 = vector.load %arg7[%c1_92, %c0_93, %c0_94] : memref<2x32x32xbf16, #tpu.memory_space<vmem>>, vector<1x32x32xbf16>
    %247 = vector.shape_cast %246 : vector<1x32x32xbf16> to vector<32x32xbf16>
    %cst_95 = arith.constant dense<0.000000e+00> : vector<8x32xf32>
    %248 = tpu.matmul %245, %247, %cst_95 {dimension_numbers = #tpu.dot_dimension_numbers<[1], [0], [0], [1], [0, 0, 1, 1], [], []>} : vector<8x32xbf16>, vector<32x32xbf16>, vector<8x32xf32> -> vector<8x32xf32>
    %249 = vector.extract_strided_slice %195 {offsets = [0, 0], sizes = [1, 32], strides = [1, 1]} : vector<8x32xf32> to vector<1x32xf32>
    %250 = vector.broadcast %249 : vector<1x32xf32> to vector<8x32xf32>
    %251 = arith.addf %248, %250 : vector<8x32xf32>
    %252 = arith.addf %251, %193 : vector<8x32xf32>
    %253 = vector.extract_strided_slice %195 {offsets = [1, 0], sizes = [1, 32], strides = [1, 1]} : vector<8x32xf32> to vector<1x32xf32>
    %254 = vector.extract_strided_slice %195 {offsets = [2, 0], sizes = [1, 32], strides = [1, 1]} : vector<8x32xf32> to vector<1x32xf32>
    %cst_96 = arith.constant dense<0.000000e+00> : vector<8xf32>
    %255 = vector.multi_reduction <add>, %252, %cst_96 [1] : vector<8x32xf32> to vector<8xf32>
    %256 = vector.shape_cast %255 : vector<8xf32> to vector<8x1xf32>
    %cst_97 = arith.constant 3.200000e+01 : f32
    %257 = vector.broadcast %cst_97 : f32 to vector<8x1xf32>
    %258 = arith.divf %256, %257 : vector<8x1xf32>
    %259 = vector.broadcast %258 : vector<8x1xf32> to vector<8x32xf32>
    %260 = arith.subf %252, %259 : vector<8x32xf32>
    %261 = arith.mulf %260, %260 : vector<8x32xf32>
    %cst_98 = arith.constant dense<0.000000e+00> : vector<8xf32>
    %262 = vector.multi_reduction <add>, %261, %cst_98 [1] : vector<8x32xf32> to vector<8xf32>
    %263 = vector.shape_cast %262 : vector<8xf32> to vector<8x1xf32>
    %cst_99 = arith.constant 3.200000e+01 : f32
    %264 = vector.broadcast %cst_99 : f32 to vector<8x1xf32>
    %265 = arith.divf %263, %264 : vector<8x1xf32>
    %266 = vector.broadcast %258 : vector<8x1xf32> to vector<8x32xf32>
    %267 = arith.subf %252, %266 : vector<8x32xf32>
    %cst_100 = arith.constant 9.99999996E-13 : f32
    %268 = vector.broadcast %cst_100 : f32 to vector<8x1xf32>
    %269 = arith.addf %265, %268 : vector<8x1xf32>
    %270 = math.rsqrt %269 : vector<8x1xf32>
    %271 = vector.broadcast %270 : vector<8x1xf32> to vector<8x32xf32>
    %272 = arith.mulf %267, %271 : vector<8x32xf32>
    %273 = vector.broadcast %253 : vector<1x32xf32> to vector<8x32xf32>
    %274 = arith.mulf %272, %273 : vector<8x32xf32>
    %275 = vector.broadcast %254 : vector<1x32xf32> to vector<8x32xf32>
    %276 = arith.addf %274, %275 : vector<8x32xf32>
    %277 = arith.truncf %276 : vector<8x32xf32> to vector<8x32xbf16>
    %c1_101 = arith.constant 1 : index
    %c0_102 = arith.constant 0 : index
    %c0_103 = arith.constant 0 : index
    %278 = vector.load %arg9[%c1_101, %c0_102, %c0_103] : memref<2x32x64xbf16, #tpu.memory_space<vmem>>, vector<1x32x64xbf16>
    %279 = vector.shape_cast %278 : vector<1x32x64xbf16> to vector<32x64xbf16>
    %cst_104 = arith.constant dense<0.000000e+00> : vector<8x64xf32>
    %280 = tpu.matmul %277, %279, %cst_104 {dimension_numbers = #tpu.dot_dimension_numbers<[1], [0], [0], [1], [0, 0, 1, 1], [], []>} : vector<8x32xbf16>, vector<32x64xbf16>, vector<8x64xf32> -> vector<8x64xf32>
    %c1_105 = arith.constant 1 : index
    %c0_106 = arith.constant 0 : index
    %c0_107 = arith.constant 0 : index
    %281 = vector.load %arg10[%c1_105, %c0_106, %c0_107] : memref<2x1x64xf32, #tpu.memory_space<vmem>>, vector<1x1x64xf32>
    %282 = vector.shape_cast %281 : vector<1x1x64xf32> to vector<1x64xf32>
    %283 = vector.broadcast %282 : vector<1x64xf32> to vector<8x64xf32>
    %284 = arith.addf %280, %283 : vector<8x64xf32>
    %cst_108 = arith.constant 5.000000e-01 : f32
    %285 = vector.broadcast %cst_108 : f32 to vector<8x64xf32>
    %286 = arith.mulf %285, %284 : vector<8x64xf32>
    %cst_109 = arith.constant 0.707106769 : f32
    %287 = vector.broadcast %cst_109 : f32 to vector<8x64xf32>
    %288 = arith.mulf %284, %287 : vector<8x64xf32>
    %289 = math.absf %288 : vector<8x64xf32>
    %cst_110 = arith.constant 0.327591091 : f32
    %290 = vector.broadcast %cst_110 : f32 to vector<8x64xf32>
    %291 = arith.mulf %290, %289 : vector<8x64xf32>
    %cst_111 = arith.constant 1.000000e+00 : f32
    %292 = vector.broadcast %cst_111 : f32 to vector<8x64xf32>
    %293 = arith.addf %292, %291 : vector<8x64xf32>
    %cst_112 = arith.constant 1.000000e+00 : f32
    %294 = vector.broadcast %cst_112 : f32 to vector<8x64xf32>
    %295 = arith.divf %294, %293 : vector<8x64xf32>
    %cst_113 = arith.constant 1.06140542 : f32
    %296 = vector.broadcast %cst_113 : f32 to vector<8x64xf32>
    %297 = arith.mulf %296, %295 : vector<8x64xf32>
    %cst_114 = arith.constant -1.45315206 : f32
    %298 = vector.broadcast %cst_114 : f32 to vector<8x64xf32>
    %299 = arith.addf %297, %298 : vector<8x64xf32>
    %300 = arith.mulf %299, %295 : vector<8x64xf32>
    %cst_115 = arith.constant 1.42141378 : f32
    %301 = vector.broadcast %cst_115 : f32 to vector<8x64xf32>
    %302 = arith.addf %300, %301 : vector<8x64xf32>
    %303 = arith.mulf %302, %295 : vector<8x64xf32>
    %cst_116 = arith.constant -0.284496725 : f32
    %304 = vector.broadcast %cst_116 : f32 to vector<8x64xf32>
    %305 = arith.addf %303, %304 : vector<8x64xf32>
    %306 = arith.mulf %305, %295 : vector<8x64xf32>
    %cst_117 = arith.constant 0.254829586 : f32
    %307 = vector.broadcast %cst_117 : f32 to vector<8x64xf32>
    %308 = arith.addf %306, %307 : vector<8x64xf32>
    %309 = arith.mulf %308, %295 : vector<8x64xf32>
    %cst_118 = arith.constant 0.000000e+00 : f32
    %310 = vector.broadcast %cst_118 : f32 to vector<8x64xf32>
    %311 = arith.subf %310, %289 : vector<8x64xf32>
    %312 = arith.mulf %311, %289 : vector<8x64xf32>
    %313 = math.exp %312 : vector<8x64xf32>
    %314 = arith.mulf %309, %313 : vector<8x64xf32>
    %cst_119 = arith.constant 1.000000e+00 : f32
    %315 = vector.broadcast %cst_119 : f32 to vector<8x64xf32>
    %316 = arith.subf %315, %314 : vector<8x64xf32>
    %cst_120 = arith.constant 0.000000e+00 : f32
    %317 = vector.broadcast %cst_120 : f32 to vector<8x64xf32>
    %318 = arith.cmpf oge, %288, %317 : vector<8x64xf32>
    %cst_121 = arith.constant 0.000000e+00 : f32
    %319 = vector.broadcast %cst_121 : f32 to vector<8x64xf32>
    %320 = arith.subf %319, %316 : vector<8x64xf32>
    %321 = arith.select %318, %316, %320 : vector<8x64xi1>, vector<8x64xf32>
    %cst_122 = arith.constant 1.000000e+00 : f32
    %322 = vector.broadcast %cst_122 : f32 to vector<8x64xf32>
    %323 = arith.addf %322, %321 : vector<8x64xf32>
    %324 = arith.mulf %286, %323 : vector<8x64xf32>
    %325 = arith.truncf %324 : vector<8x64xf32> to vector<8x64xbf16>
    %c1_123 = arith.constant 1 : index
    %c0_124 = arith.constant 0 : index
    %c0_125 = arith.constant 0 : index
    %326 = vector.load %arg11[%c1_123, %c0_124, %c0_125] : memref<2x64x32xbf16, #tpu.memory_space<vmem>>, vector<1x64x32xbf16>
    %327 = vector.shape_cast %326 : vector<1x64x32xbf16> to vector<64x32xbf16>
    %cst_126 = arith.constant dense<0.000000e+00> : vector<8x32xf32>
    %328 = tpu.matmul %325, %327, %cst_126 {dimension_numbers = #tpu.dot_dimension_numbers<[1], [0], [0], [1], [0, 0, 1, 1], [], []>} : vector<8x64xbf16>, vector<64x32xbf16>, vector<8x32xf32> -> vector<8x32xf32>
    %329 = vector.extract_strided_slice %195 {offsets = [3, 0], sizes = [1, 32], strides = [1, 1]} : vector<8x32xf32> to vector<1x32xf32>
    %330 = vector.broadcast %329 : vector<1x32xf32> to vector<8x32xf32>
    %331 = arith.addf %328, %330 : vector<8x32xf32>
    %332 = arith.addf %331, %276 : vector<8x32xf32>
    %333 = vector.extract_strided_slice %195 {offsets = [4, 0], sizes = [1, 32], strides = [1, 1]} : vector<8x32xf32> to vector<1x32xf32>
    %334 = vector.extract_strided_slice %195 {offsets = [5, 0], sizes = [1, 32], strides = [1, 1]} : vector<8x32xf32> to vector<1x32xf32>
    %cst_127 = arith.constant dense<0.000000e+00> : vector<8xf32>
    %335 = vector.multi_reduction <add>, %332, %cst_127 [1] : vector<8x32xf32> to vector<8xf32>
    %336 = vector.shape_cast %335 : vector<8xf32> to vector<8x1xf32>
    %cst_128 = arith.constant 3.200000e+01 : f32
    %337 = vector.broadcast %cst_128 : f32 to vector<8x1xf32>
    %338 = arith.divf %336, %337 : vector<8x1xf32>
    %339 = vector.broadcast %338 : vector<8x1xf32> to vector<8x32xf32>
    %340 = arith.subf %332, %339 : vector<8x32xf32>
    %341 = arith.mulf %340, %340 : vector<8x32xf32>
    %cst_129 = arith.constant dense<0.000000e+00> : vector<8xf32>
    %342 = vector.multi_reduction <add>, %341, %cst_129 [1] : vector<8x32xf32> to vector<8xf32>
    %343 = vector.shape_cast %342 : vector<8xf32> to vector<8x1xf32>
    %cst_130 = arith.constant 3.200000e+01 : f32
    %344 = vector.broadcast %cst_130 : f32 to vector<8x1xf32>
    %345 = arith.divf %343, %344 : vector<8x1xf32>
    %346 = vector.broadcast %338 : vector<8x1xf32> to vector<8x32xf32>
    %347 = arith.subf %332, %346 : vector<8x32xf32>
    %cst_131 = arith.constant 9.99999996E-13 : f32
    %348 = vector.broadcast %cst_131 : f32 to vector<8x1xf32>
    %349 = arith.addf %345, %348 : vector<8x1xf32>
    %350 = math.rsqrt %349 : vector<8x1xf32>
    %351 = vector.broadcast %350 : vector<8x1xf32> to vector<8x32xf32>
    %352 = arith.mulf %347, %351 : vector<8x32xf32>
    %353 = vector.broadcast %333 : vector<1x32xf32> to vector<8x32xf32>
    %354 = arith.mulf %352, %353 : vector<8x32xf32>
    %355 = vector.broadcast %334 : vector<1x32xf32> to vector<8x32xf32>
    %356 = arith.addf %354, %355 : vector<8x32xf32>
    %357 = arith.truncf %356 : vector<8x32xf32> to vector<8x32xbf16>
    %c0_132 = arith.constant 0 : index
    %c0_133 = arith.constant 0 : index
    %358 = vector.load %arg12[%c0_132, %c0_133] : memref<32x32xbf16, #tpu.memory_space<vmem>>, vector<32x32xbf16>
    %cst_134 = arith.constant dense<0.000000e+00> : vector<8x32xf32>
    %359 = tpu.matmul %357, %358, %cst_134 {dimension_numbers = #tpu.dot_dimension_numbers<[1], [0], [0], [1], [0, 0, 1, 1], [], []>} : vector<8x32xbf16>, vector<32x32xbf16>, vector<8x32xf32> -> vector<8x32xf32>
    %360 = vector.extract_strided_slice %0 {offsets = [2, 0], sizes = [1, 32], strides = [1, 1]} : vector<8x32xf32> to vector<1x32xf32>
    %361 = vector.broadcast %360 : vector<1x32xf32> to vector<8x32xf32>
    %362 = arith.addf %359, %361 : vector<8x32xf32>
    %cst_135 = arith.constant 5.000000e-01 : f32
    %363 = vector.broadcast %cst_135 : f32 to vector<8x32xf32>
    %364 = arith.mulf %363, %362 : vector<8x32xf32>
    %cst_136 = arith.constant 0.707106769 : f32
    %365 = vector.broadcast %cst_136 : f32 to vector<8x32xf32>
    %366 = arith.mulf %362, %365 : vector<8x32xf32>
    %367 = math.absf %366 : vector<8x32xf32>
    %cst_137 = arith.constant 0.327591091 : f32
    %368 = vector.broadcast %cst_137 : f32 to vector<8x32xf32>
    %369 = arith.mulf %368, %367 : vector<8x32xf32>
    %cst_138 = arith.constant 1.000000e+00 : f32
    %370 = vector.broadcast %cst_138 : f32 to vector<8x32xf32>
    %371 = arith.addf %370, %369 : vector<8x32xf32>
    %cst_139 = arith.constant 1.000000e+00 : f32
    %372 = vector.broadcast %cst_139 : f32 to vector<8x32xf32>
    %373 = arith.divf %372, %371 : vector<8x32xf32>
    %cst_140 = arith.constant 1.06140542 : f32
    %374 = vector.broadcast %cst_140 : f32 to vector<8x32xf32>
    %375 = arith.mulf %374, %373 : vector<8x32xf32>
    %cst_141 = arith.constant -1.45315206 : f32
    %376 = vector.broadcast %cst_141 : f32 to vector<8x32xf32>
    %377 = arith.addf %375, %376 : vector<8x32xf32>
    %378 = arith.mulf %377, %373 : vector<8x32xf32>
    %cst_142 = arith.constant 1.42141378 : f32
    %379 = vector.broadcast %cst_142 : f32 to vector<8x32xf32>
    %380 = arith.addf %378, %379 : vector<8x32xf32>
    %381 = arith.mulf %380, %373 : vector<8x32xf32>
    %cst_143 = arith.constant -0.284496725 : f32
    %382 = vector.broadcast %cst_143 : f32 to vector<8x32xf32>
    %383 = arith.addf %381, %382 : vector<8x32xf32>
    %384 = arith.mulf %383, %373 : vector<8x32xf32>
    %cst_144 = arith.constant 0.254829586 : f32
    %385 = vector.broadcast %cst_144 : f32 to vector<8x32xf32>
    %386 = arith.addf %384, %385 : vector<8x32xf32>
    %387 = arith.mulf %386, %373 : vector<8x32xf32>
    %cst_145 = arith.constant 0.000000e+00 : f32
    %388 = vector.broadcast %cst_145 : f32 to vector<8x32xf32>
    %389 = arith.subf %388, %367 : vector<8x32xf32>
    %390 = arith.mulf %389, %367 : vector<8x32xf32>
    %391 = math.exp %390 : vector<8x32xf32>
    %392 = arith.mulf %387, %391 : vector<8x32xf32>
    %cst_146 = arith.constant 1.000000e+00 : f32
    %393 = vector.broadcast %cst_146 : f32 to vector<8x32xf32>
    %394 = arith.subf %393, %392 : vector<8x32xf32>
    %cst_147 = arith.constant 0.000000e+00 : f32
    %395 = vector.broadcast %cst_147 : f32 to vector<8x32xf32>
    %396 = arith.cmpf oge, %366, %395 : vector<8x32xf32>
    %cst_148 = arith.constant 0.000000e+00 : f32
    %397 = vector.broadcast %cst_148 : f32 to vector<8x32xf32>
    %398 = arith.subf %397, %394 : vector<8x32xf32>
    %399 = arith.select %396, %394, %398 : vector<8x32xi1>, vector<8x32xf32>
    %cst_149 = arith.constant 1.000000e+00 : f32
    %400 = vector.broadcast %cst_149 : f32 to vector<8x32xf32>
    %401 = arith.addf %400, %399 : vector<8x32xf32>
    %402 = arith.mulf %364, %401 : vector<8x32xf32>
    %403 = vector.extract_strided_slice %0 {offsets = [3, 0], sizes = [1, 32], strides = [1, 1]} : vector<8x32xf32> to vector<1x32xf32>
    %404 = vector.extract_strided_slice %0 {offsets = [4, 0], sizes = [1, 32], strides = [1, 1]} : vector<8x32xf32> to vector<1x32xf32>
    %cst_150 = arith.constant dense<0.000000e+00> : vector<8xf32>
    %405 = vector.multi_reduction <add>, %402, %cst_150 [1] : vector<8x32xf32> to vector<8xf32>
    %406 = vector.shape_cast %405 : vector<8xf32> to vector<8x1xf32>
    %cst_151 = arith.constant 3.200000e+01 : f32
    %407 = vector.broadcast %cst_151 : f32 to vector<8x1xf32>
    %408 = arith.divf %406, %407 : vector<8x1xf32>
    %409 = vector.broadcast %408 : vector<8x1xf32> to vector<8x32xf32>
    %410 = arith.subf %402, %409 : vector<8x32xf32>
    %411 = arith.mulf %410, %410 : vector<8x32xf32>
    %cst_152 = arith.constant dense<0.000000e+00> : vector<8xf32>
    %412 = vector.multi_reduction <add>, %411, %cst_152 [1] : vector<8x32xf32> to vector<8xf32>
    %413 = vector.shape_cast %412 : vector<8xf32> to vector<8x1xf32>
    %cst_153 = arith.constant 3.200000e+01 : f32
    %414 = vector.broadcast %cst_153 : f32 to vector<8x1xf32>
    %415 = arith.divf %413, %414 : vector<8x1xf32>
    %416 = vector.broadcast %408 : vector<8x1xf32> to vector<8x32xf32>
    %417 = arith.subf %402, %416 : vector<8x32xf32>
    %cst_154 = arith.constant 9.99999996E-13 : f32
    %418 = vector.broadcast %cst_154 : f32 to vector<8x1xf32>
    %419 = arith.addf %415, %418 : vector<8x1xf32>
    %420 = math.rsqrt %419 : vector<8x1xf32>
    %421 = vector.broadcast %420 : vector<8x1xf32> to vector<8x32xf32>
    %422 = arith.mulf %417, %421 : vector<8x32xf32>
    %423 = vector.broadcast %403 : vector<1x32xf32> to vector<8x32xf32>
    %424 = arith.mulf %422, %423 : vector<8x32xf32>
    %425 = vector.broadcast %404 : vector<1x32xf32> to vector<8x32xf32>
    %426 = arith.addf %424, %425 : vector<8x32xf32>
    %427 = vector.shape_cast %426 : vector<8x32xf32> to vector<1x8x32xf32>
    %c0_155 = arith.constant 0 : index
    %c0_156 = arith.constant 0 : index
    %c0_157 = arith.constant 0 : index
    %c0_158 = arith.constant 0 : index
    %428 = vector.load %arg13[%c0_155, %c0_156, %c0_157, %c0_158] : memref<1x2x8x32xf32, #tpu.memory_space<vmem>>, vector<1x2x8x32xf32>
    %429 = vector.shape_cast %428 : vector<1x2x8x32xf32> to vector<2x8x32xf32>
    %430 = vector.broadcast %427 : vector<1x8x32xf32> to vector<2x8x32xf32>
    %431 = arith.mulf %430, %429 : vector<2x8x32xf32>
    %cst_159 = arith.constant dense<0.000000e+00> : vector<2x8xf32>
    %432 = vector.multi_reduction <add>, %431, %cst_159 [2] : vector<2x8x32xf32> to vector<2x8xf32>
    %c0_160 = arith.constant 0 : index
    %c0_161 = arith.constant 0 : index
    %c0_162 = arith.constant 0 : index
    %433 = vector.load %arg14[%c0_160, %c0_161, %c0_162] : memref<1x2x8xf32, #tpu.memory_space<vmem>>, vector<1x2x8xf32>
    %434 = vector.shape_cast %433 : vector<1x2x8xf32> to vector<2x8xf32>
    %435 = vector.shape_cast %432 : vector<2x8xf32> to vector<1x2x8xf32>
    tpu.vector_store %arg14[%c0_160, %c0_161, %c0_162], %435 {strides = array<i32>} : memref<1x2x8xf32, #tpu.memory_space<vmem>>, vector<1x2x8xf32>,
    return
  }
  func.func @transform_0(%arg0: i32) -> (i32, i32, i32) {
    %c0_i32 = arith.constant 0 : i32
    %c0_i32_0 = arith.constant 0 : i32
    %c0_i32_1 = arith.constant 0 : i32
    return %arg0, %c0_i32, %c0_i32_0 : i32, i32, i32
  }
  func.func @transform_1(%arg0: i32) -> (i32, i32) {
    %c0_i32 = arith.constant 0 : i32
    %c0_i32_0 = arith.constant 0 : i32
    %c0_i32_1 = arith.constant 0 : i32
    return %c0_i32, %c0_i32_0 : i32, i32
  }
  func.func @transform_2(%arg0: i32) -> (i32, i32, i32) {
    %c0_i32 = arith.constant 0 : i32
    %c0_i32_0 = arith.constant 0 : i32
    %c0_i32_1 = arith.constant 0 : i32
    return %arg0, %c0_i32, %c0_i32_0 : i32, i32, i32
  }
  func.func @transform_3(%arg0: i32) -> (i32, i32) {
    %c0_i32 = arith.constant 0 : i32
    %c0_i32_0 = arith.constant 0 : i32
    %c0_i32_1 = arith.constant 0 : i32
    return %c0_i32, %c0_i32_0 : i32, i32
  }
  func.func @transform_4(%arg0: i32) -> (i32, i32, i32) {
    %c0_i32 = arith.constant 0 : i32
    %c0_i32_0 = arith.constant 0 : i32
    %c0_i32_1 = arith.constant 0 : i32
    %c0_i32_2 = arith.constant 0 : i32
    return %c0_i32, %c0_i32_0, %c0_i32_1 : i32, i32, i32
  }
  func.func @transform_5(%arg0: i32) -> (i32, i32, i32) {
    %c0_i32 = arith.constant 0 : i32
    %c0_i32_0 = arith.constant 0 : i32
    %c0_i32_1 = arith.constant 0 : i32
    %c0_i32_2 = arith.constant 0 : i32
    return %c0_i32, %c0_i32_0, %c0_i32_1 : i32, i32, i32
  }
  func.func @transform_6(%arg0: i32) -> (i32, i32, i32) {
    %c0_i32 = arith.constant 0 : i32
    %c0_i32_0 = arith.constant 0 : i32
    %c0_i32_1 = arith.constant 0 : i32
    %c0_i32_2 = arith.constant 0 : i32
    return %c0_i32, %c0_i32_0, %c0_i32_1 : i32, i32, i32
  }
  func.func @transform_7(%arg0: i32) -> (i32, i32, i32) {
    %c0_i32 = arith.constant 0 : i32
    %c0_i32_0 = arith.constant 0 : i32
    %c0_i32_1 = arith.constant 0 : i32
    %c0_i32_2 = arith.constant 0 : i32
    return %c0_i32, %c0_i32_0, %c0_i32_1 : i32, i32, i32
  }
  func.func @transform_8(%arg0: i32) -> (i32, i32, i32) {
    %c0_i32 = arith.constant 0 : i32
    %c0_i32_0 = arith.constant 0 : i32
    %c0_i32_1 = arith.constant 0 : i32
    %c0_i32_2 = arith.constant 0 : i32
    return %c0_i32, %c0_i32_0, %c0_i32_1 : i32, i32, i32
  }
  func.func @transform_9(%arg0: i32) -> (i32, i32, i32) {
    %c0_i32 = arith.constant 0 : i32
    %c0_i32_0 = arith.constant 0 : i32
    %c0_i32_1 = arith.constant 0 : i32
    %c0_i32_2 = arith.constant 0 : i32
    return %c0_i32, %c0_i32_0, %c0_i32_1 : i32, i32, i32
  }
  func.func @transform_10(%arg0: i32) -> (i32, i32, i32) {
    %c0_i32 = arith.constant 0 : i32
    %c0_i32_0 = arith.constant 0 : i32
    %c0_i32_1 = arith.constant 0 : i32
    %c0_i32_2 = arith.constant 0 : i32
    return %c0_i32, %c0_i32_0, %c0_i32_1 : i32, i32, i32
  }
  func.func @transform_11(%arg0: i32) -> (i32, i32) {
    %c0_i32 = arith.constant 0 : i32
    %c0_i32_0 = arith.constant 0 : i32
    %c0_i32_1 = arith.constant 0 : i32
    return %c0_i32, %c0_i32_0 : i32, i32
  }
  func.func @transform_12(%arg0: i32) -> (i32, i32, i32, i32) {
    %c0_i32 = arith.constant 0 : i32
    %c0_i32_0 = arith.constant 0 : i32
    %c0_i32_1 = arith.constant 0 : i32
    %c0_i32_2 = arith.constant 0 : i32
    return %arg0, %c0_i32, %c0_i32_0, %c0_i32_1 : i32, i32, i32, i32
  }
  func.func @transform_13(%arg0: i32) -> (i32, i32, i32) {
    %c0_i32 = arith.constant 0 : i32
    %c0_i32_0 = arith.constant 0 : i32
    %c0_i32_1 = arith.constant 0 : i32
    return %arg0, %c0_i32, %c0_i32_0 : i32, i32, i32
  }
}

</mosaic_0001>

<bundles_post_ra>
// kernel: bert4rec_forward.1
= control target key start
LH: loop header
LB: loop body
LE: loop exit
PB: predicated region body
PF: predicated region fallthrough
CT: control target
= control target key end

     0   :  { %s2530_s25 = smov 0   ;;  %s2849_s0 = inlined_call_operand.vmem [shape: f32[2,8,32], index: 0, kind: input, shape index: {}]   ;;  %s2850_s1 = inlined_call_operand.vmem [shape: f32[8,32], index: 1, kind: input, shape index: {}]   ;;  %s2851_s2 = inlined_call_operand.vmem [shape: f32[2,1,8], index: 2, kind: input, shape index: {}]   ;;  %s2852_s3 = inlined_call_operand.vmem [shape: f32[8,32], index: 3, kind: input, shape index: {}]   ;;  %s2853_s4 = inlined_call_operand.vmem [shape: bf16[2,32,96], index: 4, kind: input, shape index: {}]   ;;  %s2854_s5 = inlined_call_operand.vmem [shape: f32[2,1,96], index: 5, kind: input, shape index: {}]   ;;  %s2855_s6 = inlined_call_operand.vmem [shape: bf16[2,32,32], index: 6, kind: input, shape index: {}]   ;;  %s2856_s7 = inlined_call_operand.vmem [shape: f32[2,8,32], index: 7, kind: input, shape index: {}]   ;;  %s2857_s8 = inlined_call_operand.vmem [shape: bf16[2,32,64], index: 8, kind: input, shape index: {}]   ;;  %s2858_s9 = inlined_call_operand.vmem [shape: f32[2,1,64], index: 9, kind: input, shape index: {}]   ;;  %s2859_s10 = inlined_call_operand.vmem [shape: bf16[2,64,32], index: 10, kind: input, shape index: {}]   ;;  %s2860_s11 = inlined_call_operand.vmem [shape: bf16[32,32], index: 11, kind: input, shape index: {}]   ;;  %s2861_s12 = inlined_call_operand.vmem [shape: f32[2,2,8,32], index: 12, kind: input, shape index: {}]   ;;  %s2862_s13 = inlined_call_operand.vmem [shape: f32[2,2,8], index: 13, kind: output, shape index: {}]  }
   0x1 LB: > { %s2116_s26 = sadd.s32 4294967295, %s2450_s25   ;;  %p2120_p0 = scmp.ge.s32.totalorder %s2450_s25, 1  ;;  %s2450_s25 = sphi %s2530_s25, %s23_s25  }
   0x2   : > { %p404_p1 = scmp.lt.s32.totalorder %s2450_s25, 3 }
   0x4   : > { %p405_p2 = pnand %p2120_p0, %p404_p1 }
   0x5   : > { %p454_p3 = scmp.lt.s32.totalorder (!%p405_p2), %s2116_s26, 1  ;;  %s2454_s24 = smov (!%p405_p2), 64  }
   0x6   : > { %408 = sbr.rel (%p405_p2) target bundleno = 6333 (0x18bd), region = 72  ;;  %s2456_s14 = smov (!%p405_p2), 80  }
   0x7   : > { %s2458_s16 = smov (!%p405_p2), 48   ;;  %s2459_s21 = smov (!%p405_p2), 16  }
   0xb   : > { %s2864_s26 = smov (!%p454_p3, %s2116_s26), 1  ;;  %v473_v0 = vld [vmem:[%s2850_s1] sm:$0xff]  ;;  %vm475_vm0 = vcmask 261120   ;;  %v2382_v9 = vld [vmem:[%s2853_s4 + $0x8] sm:$0xff]   ;;  %v2452_v10 = vmov 0.0   ;;  %vm2453_vm1 = vmmov 0   ;;  %v490_v15 = vlaneseq }
   0xc   : > { %s2121_s27 = sshll.u32 %s2864_s26, 3  ;;  %2246 = vmatprep.subr.bf16.mxu0 %v2452_v10  ;;  %2250 = vmatprep.mubr.msk.bf16.mxu0 %vm2453_vm1, %v2452_v10  ;;  %v2383_v11 = vld [vmem:[%s2853_s4] sm:$0xff]   ;;  %vm572_vm2 = vcmask 130048   ;;  %s460_s30 = scalar_lea.vmem %s2851_s2, %s2864_s26  ;;  %vm655_vm3 = vcmask 64512   ;;  %vm1134_vm5 = vcmask 523264   ;;  %vm2037_vm8 = vcmask 1041409  }
   0xd   : > { %s457_s15 = scalar_lea.vmem %s2849_s0, %s2121_s27  ;;  %2247 = vmatpush3.bf16.msra.mxu0 %v2382_v9  ;;  %2254 = vmatprep.subr.mxu1 %v2452_v10  ;;  %v2564_v16 = vshrl.u32 %v490_v15, 7  ;;  %v2572_v18 = vld [vmem:[%s2852_s3] sm:$0xff]  ;;  %s2455_s27 = smov 96   ;;  %vm2040_vm9 = vcmask 58368  }
   0xe   : > { %v472_v1 = vld [vmem:[%s457_s15] sm:$0xff]  ;;  %2248 = vmatprep.subr.bf16.mxu0 %v2452_v10  ;;  %2256 = vmatprep.mubr.msk.f32.mxu1 %vm2453_vm1, %v2452_v10  ;;  %s2457_s15 = smov 112   ;;  %s2198_s19 = sshll.u32 %s2864_s26, 4 }
   0xf   : > { %v474_v2 = vadd.f32 %v473_v0, %v472_v1  ;;  %v2567_v17 = vsub.s32 0, %v2564_v16  ;;  %v2575_v19 = vsub.s32 1, %v2564_v16  ;;  %v2125_v27 = vld [vmem:[%s2854_s5] ss:$0 sm:$0xff]  ;;  %s465_s23 = scalar_lea.vmem %s2861_s12, %s2198_s19  ;;  %s2124_s28 = sshll.u32 %s2864_s26, 1 }
  0x10   : > { %v2603_v36 = vld [vmem:[%s460_s30] ss:$0 sm:$0xff] }
  0x11   : > { %v476_v3 = vsel %vm475_vm0, %v474_v2, 0.0  ;;  %2249 = vmatpush3.bf16.msra.mxu0 %v2383_v11  ;;  %v493_v20 = vrot.slane %v2572_v18, %v2567_v17  ;;  %v498_v23 = vrot.slane %v2572_v18, %v2575_v19  ;;  %v2642_v11 = vld [vmem:[%s2856_s7] sm:$0xff] }
  0x12   : > { %477 = vadd.xlane.f32.xlu0 %v476_v3  ;;  %2269 = vmatprep.subr.mxu0 %v2452_v10  ;;  %v2384_v3 = vld [vmem:[%s2855_s6 + $0x8] sm:$0xff]  }
  0x9b   : > { %v478_v4 = vpop.xlane.xlu0 %477 }
  0x9c   : > { %v480_v5 = vmul.f32 0.03125, %v478_v4  ;;  %v2385_v4 = vld [vmem:[%s2855_s6] sm:$0xff]  }
  0x9e   : > { %v481_v6 = vsub.f32 %v474_v2, %v480_v5 }
  0xa0   : > { %v482_v7 = vmul.f32 %v481_v6, %v481_v6 }
  0xa2   : > { %v483_v8 = vsel %vm475_vm0, %v482_v7, 0.0 }
  0xa3   : > { %484 = vadd.xlane.f32.xlu0 %v483_v8 }
 0x12c   : > { %v485_v12 = vpop.xlane.xlu0 %484 }
 0x12d   : > { %v486_v13 = vmul.f32 0.03125, %v485_v12  ;;  %v923_v12 = vrot.slane %v2642_v11, %v2567_v17 }
 0x12f   : > { %v487_v14 = vadd.f32 1e-12, %v486_v13 }
 0x131   : > { %2404 = vrsqrt.f32 %v487_v14 }
 0x13e   : > { %v2405_v21 = vpop.eup %2404 }
 0x13f   : > { %v489_v22 = vmul.f32 %v2405_v21, %v481_v6 }
 0x141   : > { %v494_v24 = vmul.f32 %v493_v20, %v489_v22 }
 0x143   : > { %v2581_v25 = vadd.f32 %v498_v23, %v494_v24 }
 0x145   : > { %v502_v26 = vpack.c.bf16 %v2581_v25, %v2581_v25 }
 0x147   : > { %2251 = vmatmul.mubr.msk.bf16.vlgmr.msra.gmra.mxu0 %vm475_vm0, %v502_v26 }
 0x148   : > { %2271 = vmatprep.mubr.msk.f32.mxu0 %vm2453_vm1, %v2452_v10 }
 0x207   : > { %v563_v28 = vpop.f32.mrf.mxu0 }
 0x208   : > { %v564_v29 = vadd.f32 %v2125_v27, %v563_v28 }
 0x209   : > { %v2252_v30 = vpop.f32.mrf.mxu0 }
 0x20a   : > { %667 = vrot.lane.b32.xlu0 %v564_v29, %s2454_s24  ;;  %570 = vrot.lane.b32.xlu1 %v564_v29, %s2455_s27 }
 0x20b   : > { %v566_v31 = vpop.f32.mrf.mxu0 }
 0x20c   : > { %v2386_v31 = vld [vmem:[%s2857_s8 + $0x8] sm:$0xff]  }
 0x20d   : > { %v2253_v32 = vpop.f32.mrf.mxu0 }
 0x27c   : > { %v571_v33 = vpop.permute.xlu1 %570  ;;  %v668_v34 = vpop.permute.xlu0 %667 }
 0x27d   : > { %2255 = vmatpush3.xpose.msk.msra.mxu1 %vm572_vm2, %v571_v33 }
 0x27e   : > { %2259 = vmatprep.subr.mxu1 %v2452_v10 }
 0x280   : > { %2257 = vmatmul.mubr.msk.f32.vlgmr.msra.gmra.mxu1 %vm572_vm2, %v564_v29 }
 0x281   : > { %2260 = vmatpush3.msra.mxu1 %v668_v34  ;;  %2261 = vmatprep.mubr.msk.f32.mxu1 %vm2453_vm1, %v2452_v10 }
 0x282   : > { %2264 = vmatprep.subr.mxu1 %v2452_v10 }
 0x340   : > { %v643_v35 = vpop.f32.mrf.mxu1 }
 0x341   : > { %v647_v37 = vmul.f32 0.25, %v643_v35  ;;  %v2658_v35 = vsub.s32 2, %v2564_v16 }
 0x342   : > { %v2258_v38 = vpop.f32.mrf.mxu1 }
 0x343   : > { %v654_v39 = vadd.f32 %v2603_v36, %v647_v37  ;;  %v996_v37 = vrot.slane %v2642_v11, %v2575_v19 }
 0x345   : > { %v656_v40 = vsel %vm655_vm3, %v654_v39, -inf }
 0x346   : > { %657 = vmax.xlane.f32.xlu1 %v656_v40  ;;  %v1001_v40 = vrot.slane %v2642_v11, %v2658_v35 }
 0x3cf   : > { %v658_v41 = vpop.xlane.xlu1 %657 }
 0x3d0   : > { %v659_v42 = vsub.f32 %v654_v39, %v658_v41 }
 0x3d2   : > { %v660_v43 = vmul.f32 1.442695, %v659_v42 }
 0x3d4   : > { %2406 = vpow2.f32 %v660_v43 }
 0x3e1   : > { %v2407_v44 = vpop.eup %2406 }
 0x3e2   : > { %v662_v45 = vsel %vm655_vm3, %v2407_v44, 0.0 }
 0x3e3   : > { %663 = vadd.xlane.f32.xlu0 %v662_v45  ;;  %v2389_v45 = vld [vmem:[%s2859_s10 + $0x10] sm:$0xff]  }
 0x3f9   : > { %745 = vrot.lane.b32.xlu0 %v564_v29, %s2456_s14 }
 0x3fd   : > { %743 = vrot.lane.b32.xlu0 %v564_v29, %s2457_s15 }
 0x46c   : > { %v664_v46 = vpop.xlane.xlu0 %663 }
 0x46d   : > { %2408 = vrcp.f32 %v664_v46  ;;  %v2390_v46 = vld [vmem:[%s2859_s10 + $0x8] sm:$0xff]  }
 0x470   : > { %v746_v48 = vpop.permute.xlu0 %745 }
 0x474   : > { %v744_v50 = vpop.permute.xlu0 %743 }
 0x47a   : > { %v2409_v47 = vpop.eup %2408 }
 0x47b   : > { %v666_v49 = vmul.f32 %v2409_v47, %v2407_v44  ;;  %v2388_v44 = vld [vmem:[%s2859_s10 + $0x18] sm:$0xff]   ;;  %v2391_v47 = vld [vmem:[%s2859_s10] sm:$0xff]  }
 0x47d   : > { %2262 = vmatmul.mubr.msk.f32.vlgmr.msra.gmra.mxu1 %vm655_vm3, %v666_v49 }
 0x47e   : > { %2265 = vmatpush3.xpose.msk.msra.mxu1 %vm572_vm2, %v746_v48  ;;  %2266 = vmatprep.mubr.msk.f32.mxu1 %vm2453_vm1, %v2452_v10  ;;  %v2139_v48 = vld [vmem:[%s2858_s9] ss:$0 sm:$0xff] }
 0x47f   : > { %2274 = vmatprep.subr.bf16.mxu1 %v2452_v10 }
 0x481   : > { %2267 = vmatmul.mubr.msk.f32.vlgmr.msra.gmra.mxu1 %vm572_vm2, %v744_v50 }
 0x482   : > { %2278 = vmatprep.mubr.msk.bf16.mxu1 %vm2453_vm1, %v2452_v10  ;;  %2275 = vmatpush3.bf16.msra.mxu1 %v2384_v3 }
 0x483   : > { %2276 = vmatprep.subr.bf16.mxu1 %v2452_v10 }
 0x486   : > { %2277 = vmatpush3.bf16.msra.mxu1 %v2385_v4 }
 0x487   : > { %2290 = vmatprep.subr.bf16.mxu1 %v2452_v10 }
 0x53d   : > { %v739_v51 = vpop.f32.mrf.mxu1 }
 0x53f   : > { %v2263_v52 = vpop.f32.mrf.mxu1 }
 0x541   : > { %v817_v53 = vpop.f32.mrf.mxu1 }
 0x542   : > { %v821_v54 = vmul.f32 0.25, %v817_v53 }
 0x543   : > { %v2268_v55 = vpop.f32.mrf.mxu1 }
 0x544   : > { %v822_v56 = vadd.f32 %v2603_v36, %v821_v54 }
 0x546   : > { %v823_v57 = vsel %vm655_vm3, %v822_v56, -inf }
 0x547   : > { %824 = vmax.xlane.f32.xlu1 %v823_v57 }
 0x558   : > { %834 = vrot.lane.b32.xlu1 %v564_v29, %s2458_s16 }
 0x5d0   : > { %v825_v58 = vpop.xlane.xlu1 %824 }
 0x5d1   : > { %v826_v59 = vsub.f32 %v822_v56, %v825_v58 }
 0x5d3   : > { %v827_v60 = vmul.f32 1.442695, %v826_v59 }
 0x5d4   : > { %v835_v61 = vpop.permute.xlu1 %834 }
 0x5d5   : > { %2410 = vpow2.f32 %v827_v60  ;;  %2270 = vmatpush3.msra.mxu0 %v835_v61 }
 0x5d6   : > { %2282 = vmatprep.subr.bf16.mxu0 %v2452_v10 }
 0x5e2   : > { %v2411_v62 = vpop.eup %2410 }
 0x5e3   : > { %v829_v63 = vsel %vm655_vm3, %v2411_v62, 0.0 }
 0x5e4   : > { %830 = vadd.xlane.f32.xlu0 %v829_v63 }
 0x66d   : > { %v831_v0 = vpop.xlane.xlu0 %830 }
 0x66e   : > { %2412 = vrcp.f32 %v831_v0 }
 0x67b   : > { %v2413_v1 = vpop.eup %2412 }
 0x67c   : > { %v833_v2 = vmul.f32 %v2413_v1, %v2411_v62 }
 0x67e   : > { %2272 = vmatmul.mubr.msk.f32.vlgmr.msra.gmra.mxu0 %vm655_vm3, %v833_v2 }
 0x67f   : > { %2286 = vmatprep.mubr.msk.bf16.mxu0 %vm2453_vm1, %v2452_v10  ;;  %2283 = vmatpush3.bf16.msra.mxu0 %v2386_v31 }
 0x680   : > { %2284 = vmatprep.subr.bf16.mxu0 %v2452_v10 }
 0x73e   : > { %v906_v5 = vpop.f32.mrf.mxu0 }
 0x73f   : > { %911 = vrot.lane.b32.xlu1 %v906_v5, %s2459_s21 }
 0x740   : > { %v2273_v6 = vpop.f32.mrf.mxu0 }
 0x7b1   : > { %v912_v7 = vpop.permute.xlu1 %911 }
 0x7b2   : > { %v914_v8 = vsel %vm572_vm2, %v739_v51, %v912_v7 }
 0x7b3   : > { %v915_v9 = vpack.c.bf16 %v914_v8, %v914_v8 }
 0x7b5   : > { %2279 = vmatmul.mubr.msk.bf16.vlgmr.msra.gmra.mxu1 %vm475_vm0, %v915_v9 }
 0x7b6   : > { %2298 = vmatprep.mubr.msk.bf16.mxu1 %vm2453_vm1, %v2452_v10  ;;  %2291 = vmatpush3.bf16.msra.mxu1 %v2388_v44  ;;  %v2705_v44 = vsub.s32 4, %v2564_v16 }
 0x7b7   : > { %2292 = vmatprep.subr.bf16.mxu1 %v2452_v10 }
 0x7ba   : > { %2293 = vmatpush3.bf16.msra.mxu1 %v2389_v45  ;;  %v1199_v45 = vsub.s32 5, %v2564_v16 }
 0x7bb   : > { %2294 = vmatprep.subr.bf16.mxu1 %v2452_v10 }
 0x7be   : > { %2295 = vmatpush3.bf16.msra.mxu1 %v2390_v46  ;;  %v1195_v46 = vrot.slane %v2642_v11, %v2705_v44 }
 0x7bf   : > { %2296 = vmatprep.subr.bf16.mxu1 %v2452_v10 }
 0x7c2   : > { %2297 = vmatpush3.bf16.msra.mxu1 %v2391_v47 }
 0x7c3   : > { %2320 = vmatprep.subr.mxu1 %v2452_v10 }
 0x875   : > { %v973_v13 = vpop.f32.mrf.mxu1 }
 0x876   : > { %v974_v14 = vadd.f32 %v973_v13, %v923_v12 }
 0x877   : > { %v2280_v20 = vpop.f32.mrf.mxu1 }
 0x878   : > { %v979_v21 = vadd.f32 %v974_v14, %v2581_v25  ;;  %v2387_v25 = vld [vmem:[%s2857_s8] sm:$0xff]  }
 0x879   : > { %v976_v22 = vpop.f32.mrf.mxu1  ;;  %2285 = vmatpush3.bf16.msra.mxu0 %v2387_v25 }
 0x87a   : > { %v980_v23 = vsel %vm475_vm0, %v979_v21, 0.0  ;;  %2302 = vmatprep.subr.bf16.mxu0 %v2452_v10 }
 0x87b   : > { %981 = vadd.xlane.f32.xlu1 %v980_v23  ;;  %v2281_v24 = vpop.f32.mrf.mxu1  ;;  %v2690_v23 = vsub.s32 3, %v2564_v16 }
 0x87d   : > { %v1109_v24 = vrot.slane %v2642_v11, %v2690_v23 }
 0x904   : > { %v982_v26 = vpop.xlane.xlu1 %981 }
 0x905   : > { %v983_v27 = vmul.f32 0.03125, %v982_v26 }
 0x907   : > { %v984_v28 = vsub.f32 %v979_v21, %v983_v27 }
 0x909   : > { %v985_v29 = vmul.f32 %v984_v28, %v984_v28 }
 0x90b   : > { %v986_v30 = vsel %vm475_vm0, %v985_v29, 0.0 }
 0x90c   : > { %987 = vadd.xlane.f32.xlu0 %v986_v30 }
 0x995   : > { %v988_v32 = vpop.xlane.xlu0 %987 }
 0x996   : > { %v989_v33 = vmul.f32 0.03125, %v988_v32 }
 0x998   : > { %v990_v34 = vadd.f32 1e-12, %v989_v33 }
 0x99a   : > { %2414 = vrsqrt.f32 %v990_v34 }
 0x9a7   : > { %v2415_v38 = vpop.eup %2414 }
 0x9a8   : > { %v992_v39 = vmul.f32 %v2415_v38, %v984_v28 }
 0x9aa   : > { %v997_v41 = vmul.f32 %v996_v37, %v992_v39  ;;  %v2392_v39 = vld [vmem:[%s2853_s4 + $0x18] sm:$0xff]  }
 0x9ac   : > { %v1002_v42 = vadd.f32 %v1001_v40, %v997_v41  ;;  %v2393_v40 = vld [vmem:[%s2853_s4 + $0x10] sm:$0xff]  }
 0x9ae   : > { %v1003_v43 = vpack.c.bf16 %v1002_v42, %v1002_v42 }
 0x9b0   : > { %2287 = vmatmul.mubr.msk.bf16.vlgmr.msra.gmra.mxu0 %vm475_vm0, %v1003_v43 }
 0x9b1   : > { %2306 = vmatprep.mubr.msk.bf16.mxu0 %vm2453_vm1, %v2452_v10  ;;  %2303 = vmatpush3.bf16.msra.mxu0 %v2392_v39 }
 0x9b2   : > { %2304 = vmatprep.subr.bf16.mxu0 %v2452_v10 }
 0x9b5   : > { %2305 = vmatpush3.bf16.msra.mxu0 %v2393_v40 }
 0x9b6   : > { %2310 = vmatprep.subr.mxu0 %v2452_v10 }
 0xa70   : > { %v1064_v49 = vpop.f32.mrf.mxu0 }
 0xa71   : > { %v1065_v50 = vadd.f32 %v2139_v48, %v1064_v49  ;;  %v1200_v49 = vrot.slane %v2642_v11, %v1199_v45 }
 0xa72   : > { %v2288_v51 = vpop.f32.mrf.mxu0 }
 0xa73   : > { %v1071_v52 = vmul.f32 0.70710677, %v1065_v50  ;;  %v1070_v14 = vmul.f32 0.5, %v1065_v50 }
 0xa74   : > { %v1067_v53 = vpop.f32.mrf.mxu0 }
 0xa75   : > { %v1072_v54 = vand.u32 2147483647, %v1071_v52  ;;  %vm1092_vm4 = vcmp.ge.f32.partialorder %v1071_v52, 0.0  ;;  %v2154_v53 = vld [vmem:[%s2854_s5 + $0x1] ss:$0 sm:$0xff] }
 0xa76   : > { %v2289_v55 = vpop.f32.mrf.mxu0 }
 0xa77   : > { %v1073_v56 = vmul.f32 0.3275911, %v1072_v54  ;;  %v1086_v58 = vsub.f32 0.0, %v1072_v54 }
 0xa79   : > { %v1074_v57 = vadd.f32 1.0, %v1073_v56  ;;  %v1087_v59 = vmul.f32 %v1086_v58, %v1072_v54 }
 0xa7b   : > { %2416 = vrcp.f32 %v1074_v57  ;;  %v1088_v62 = vmul.f32 1.442695, %v1087_v59 }
 0xa7d   : > { %2418 = vpow2.f32 %v1088_v62 }
 0xa88   : > { %v2417_v60 = vpop.eup %2416 }
 0xa89   : > { %v1077_v61 = vmul.f32 1.0614054, %v2417_v60 }
 0xa8a   : > { %v2419_v7 = vpop.eup %2418 }
 0xa8b   : > { %v1078_v63 = vadd.f32 -1.4531521, %v1077_v61 }
 0xa8d   : > { %v1079_v0 = vmul.f32 %v2417_v60, %v1078_v63 }
 0xa8f   : > { %v1080_v1 = vadd.f32 1.4214138, %v1079_v0 }
 0xa91   : > { %v1081_v2 = vmul.f32 %v2417_v60, %v1080_v1 }
 0xa93   : > { %v1082_v3 = vadd.f32 -0.28449672, %v1081_v2 }
 0xa95   : > { %v1083_v4 = vmul.f32 %v2417_v60, %v1082_v3 }
 0xa97   : > { %v1084_v5 = vadd.f32 0.2548296, %v1083_v4 }
 0xa99   : > { %v1085_v6 = vmul.f32 %v2417_v60, %v1084_v5 }
 0xa9b   : > { %v1090_v8 = vmul.f32 %v2419_v7, %v1085_v6 }
 0xa9d   : > { %v1091_v9 = vsub.f32 1.0, %v1090_v8 }
 0xa9f   : > { %v1093_v12 = vsub.f32 0.0, %v1091_v9 }
 0xaa1   : > { %v1094_v13 = vsel %vm1092_vm4, %v1091_v9, %v1093_v12 }
 0xaa2   : > { %v1095_v20 = vadd.f32 1.0, %v1094_v13 }
 0xaa4   : > { %v1096_v21 = vmul.f32 %v1095_v20, %v1070_v14 }
 0xaa6   : > { %v1097_v22 = vpack.c.bf16 %v1096_v21, %v1096_v21 }
 0xaa8   : > { %2299 = vmatmul.mubr.msk.bf16.vlgmr.msra.gmra.mxu1 %vm1134_vm5, %v1097_v22 }
 0xaa9   : > { %2322 = vmatprep.mubr.msk.f32.mxu1 %vm2453_vm1, %v2452_v10 }
 0xb68   : > { %v1172_v26 = vpop.f32.mrf.mxu1 }
 0xb69   : > { %v1173_v27 = vadd.f32 %v1172_v26, %v1109_v24 }
 0xb6a   : > { %v2300_v28 = vpop.f32.mrf.mxu1 }
 0xb6b   : > { %v1178_v29 = vadd.f32 %v1173_v27, %v1002_v42 }
 0xb6c   : > { %v1175_v30 = vpop.f32.mrf.mxu1 }
 0xb6d   : > { %v1179_v31 = vsel %vm475_vm0, %v1178_v29, 0.0 }
 0xb6e   : > { %1180 = vadd.xlane.f32.xlu0 %v1179_v31  ;;  %v2301_v25 = vpop.f32.mrf.mxu1 }
 0xbf7   : > { %v1181_v32 = vpop.xlane.xlu0 %1180 }
 0xbf8   : > { %v1182_v33 = vmul.f32 0.03125, %v1181_v32  ;;  %v2394_v32 = vld [vmem:[%s2855_s6 + $0x18] sm:$0xff]  }
 0xbfa   : > { %v1183_v34 = vsub.f32 %v1178_v29, %v1182_v33  ;;  %v2395_v33 = vld [vmem:[%s2855_s6 + $0x10] sm:$0xff]  }
 0xbfc   : > { %v1184_v37 = vmul.f32 %v1183_v34, %v1183_v34 }
 0xbfe   : > { %v1185_v38 = vsel %vm475_vm0, %v1184_v37, 0.0 }
 0xbff   : > { %1186 = vadd.xlane.f32.xlu0 %v1185_v38 }
 0xc88   : > { %v1187_v41 = vpop.xlane.xlu0 %1186 }
 0xc89   : > { %v1188_v42 = vmul.f32 0.03125, %v1187_v41 }
 0xc8b   : > { %v1189_v43 = vadd.f32 1e-12, %v1188_v42 }
 0xc8d   : > { %2420 = vrsqrt.f32 %v1189_v43  ;;  %v2768_v43 = vld [vmem:[%s2856_s7 + $0x8] sm:$0xff] }
 0xc9a   : > { %v2421_v47 = vpop.eup %2420 }
 0xc9b   : > { %v1191_v48 = vmul.f32 %v2421_v47, %v1183_v34 }
 0xc9d   : > { %v1196_v50 = vmul.f32 %v1195_v46, %v1191_v48  ;;  %v1620_v46 = vrot.slane %v2768_v43, %v2567_v17  ;;  %v2396_v17 = vld [vmem:[%s2857_s8 + $0x18] sm:$0xff]  }
 0xc9f   : > { %v2713_v51 = vadd.f32 %v1200_v49, %v1196_v50 }
 0xca1   : > { %v1204_v52 = vpack.c.bf16 %v2713_v51, %v2713_v51 }
 0xca3   : > { %2307 = vmatmul.mubr.msk.bf16.vlgmr.msra.gmra.mxu0 %vm475_vm0, %v1204_v52 }
 0xca4   : > { %2312 = vmatprep.mubr.msk.f32.mxu0 %vm2453_vm1, %v2452_v10 }
 0xd63   : > { %v1267_v54 = vpop.f32.mrf.mxu0 }
 0xd64   : > { %v1268_v55 = vadd.f32 %v2154_v53, %v1267_v54 }
 0xd65   : > { %v2308_v56 = vpop.f32.mrf.mxu0 }
 0xd66   : > { %1441 = vrot.lane.b32.xlu1 %v1268_v55, %s2456_s14  ;;  %1274 = vrot.lane.b32.xlu0 %v1268_v55, %s2455_s27  ;;  %s469_s27 = scalar_lea.vmem %s2862_s13, %s2124_s28 }
 0xd67   : > { %v1270_v11 = vpop.f32.mrf.mxu0 }
 0xd69   : > { %v2309_v57 = vpop.f32.mrf.mxu0 }
 0xd6a   : > { %1439 = vrot.lane.b32.xlu0 %v1268_v55, %s2457_s15 }
 0xdd8   : > { %v1442_v58 = vpop.permute.xlu1 %1441  ;;  %v1275_v59 = vpop.permute.xlu0 %1274 }
 0xdd9   : > { %2311 = vmatpush3.xpose.msk.msra.mxu0 %vm572_vm2, %v1275_v59  ;;  %2321 = vmatpush3.xpose.msk.msra.mxu1 %vm572_vm2, %v1442_v58 }
 0xdda   : > { %2315 = vmatprep.subr.mxu0 %v2452_v10  ;;  %2330 = vmatprep.subr.bf16.mxu1 %v2452_v10 }
 0xddc   : > { %2313 = vmatmul.mubr.msk.f32.vlgmr.msra.gmra.mxu0 %vm572_vm2, %v1268_v55  ;;  %v1440_v60 = vpop.permute.xlu0 %1439 }
 0xddd   : > { %2323 = vmatmul.mubr.msk.f32.vlgmr.msra.gmra.mxu1 %vm572_vm2, %v1440_v60  ;;  %2317 = vmatprep.mubr.msk.f32.mxu0 %vm2453_vm1, %v2452_v10 }
 0xdde   : > { %2334 = vmatprep.mubr.msk.bf16.mxu1 %vm2453_vm1, %v2452_v10  ;;  %2331 = vmatpush3.bf16.msra.mxu1 %v2394_v32 }
 0xddf   : > { %2332 = vmatprep.subr.bf16.mxu1 %v2452_v10 }
 0xde2   : > { %2333 = vmatpush3.bf16.msra.mxu1 %v2395_v33 }
 0xde3   : > { %2346 = vmatprep.subr.bf16.mxu1 %v2452_v10 }
 0xe9c   : > { %v1346_v61 = vpop.f32.mrf.mxu0 }
 0xe9d   : > { %v1350_v62 = vmul.f32 0.25, %v1346_v61  ;;  %v1513_v63 = vpop.f32.mrf.mxu1 }
 0xe9e   : > { %v1517_v0 = vmul.f32 0.25, %v1513_v63  ;;  %v2314_v1 = vpop.f32.mrf.mxu0 }
 0xe9f   : > { %v2324_v2 = vpop.f32.mrf.mxu1  ;;  %v1351_v3 = vadd.f32 %v2603_v36, %v1350_v62  ;;  %v1693_v62 = vrot.slane %v2768_v43, %v2575_v19  ;;  %v1698_v1 = vrot.slane %v2768_v43, %v2658_v35  ;;  %v2399_v19 = vld [vmem:[%s2859_s10 + $0x30] sm:$0xff]  }
 0xea0   : > { %v1518_v4 = vadd.f32 %v2603_v36, %v1517_v0 }
 0xea1   : > { %v1352_v5 = vsel %vm655_vm3, %v1351_v3, -inf }
 0xea2   : > { %1353 = vmax.xlane.f32.xlu0 %v1352_v5  ;;  %v1519_v6 = vsel %vm655_vm3, %v1518_v4, -inf  ;;  %v2398_v5 = vld [vmem:[%s2859_s10 + $0x38] sm:$0xff]  }
 0xea3   : > { %1520 = vmax.xlane.f32.xlu1 %v1519_v6  ;;  %v2400_v6 = vld [vmem:[%s2859_s10 + $0x28] sm:$0xff]  }
 0xeb4   : > { %1530 = vrot.lane.b32.xlu1 %v1268_v55, %s2458_s16 }
 0xf2b   : > { %v1354_v7 = vpop.xlane.xlu0 %1353 }
 0xf2c   : > { %v1355_v8 = vsub.f32 %v1351_v3, %v1354_v7  ;;  %v1521_v9 = vpop.xlane.xlu1 %1520  ;;  %v2401_v7 = vld [vmem:[%s2859_s10 + $0x20] sm:$0xff]  }
 0xf2d   : > { %v1522_v12 = vsub.f32 %v1518_v4, %v1521_v9 }
 0xf2e   : > { %v1356_v13 = vmul.f32 1.442695, %v1355_v8  ;;  %v2176_v8 = vld [vmem:[%s2858_s9 + $0x1] ss:$0 sm:$0xff] }
 0xf2f   : > { %v1523_v14 = vmul.f32 1.442695, %v1522_v12 }
 0xf30   : > { %2422 = vpow2.f32 %v1356_v13  ;;  %v1531_v30 = vpop.permute.xlu1 %1530 }
 0xf31   : > { %2424 = vpow2.f32 %v1523_v14 }
 0xf3d   : > { %v2423_v20 = vpop.eup %2422 }
 0xf3e   : > { %v1358_v21 = vsel %vm655_vm3, %v2423_v20, 0.0  ;;  %v2425_v36 = vpop.eup %2424 }
 0xf3f   : > { %1359 = vadd.xlane.f32.xlu0 %v1358_v21  ;;  %v1525_v22 = vsel %vm655_vm3, %v2425_v36, 0.0 }
 0xf43   : > { %1526 = vadd.xlane.f32.xlu0 %v1525_v22 }
 0xf59   : > { %1363 = vrot.lane.b32.xlu0 %v1268_v55, %s2454_s24 }
 0xfc8   : > { %v1360_v24 = vpop.xlane.xlu0 %1359 }
 0xfc9   : > { %2426 = vrcp.f32 %v1360_v24 }
 0xfcc   : > { %v1527_v26 = vpop.xlane.xlu0 %1526 }
 0xfcd   : > { %2428 = vrcp.f32 %v1527_v26 }
 0xfd0   : > { %v1364_v27 = vpop.permute.xlu0 %1363 }
 0xfd1   : > { %2316 = vmatpush3.msra.mxu0 %v1364_v27 }
 0xfd2   : > { %2325 = vmatprep.subr.mxu0 %v2452_v10 }
 0xfd6   : > { %v2427_v28 = vpop.eup %2426 }
 0xfd7   : > { %v1362_v29 = vmul.f32 %v2427_v28, %v2423_v20 }
 0xfd9   : > { %2318 = vmatmul.mubr.msk.f32.vlgmr.msra.gmra.mxu0 %vm655_vm3, %v1362_v29 }
 0xfda   : > { %v2429_v31 = vpop.eup %2428  ;;  %2326 = vmatpush3.msra.mxu0 %v1531_v30  ;;  %2327 = vmatprep.mubr.msk.f32.mxu0 %vm2453_vm1, %v2452_v10 }
 0xfdb   : > { %v1529_v25 = vmul.f32 %v2429_v31, %v2425_v36  ;;  %2338 = vmatprep.subr.bf16.mxu0 %v2452_v10 }
 0xfdd   : > { %2328 = vmatmul.mubr.msk.f32.vlgmr.msra.gmra.mxu0 %vm655_vm3, %v1529_v25 }
 0xfde   : > { %2342 = vmatprep.mubr.msk.bf16.mxu0 %vm2453_vm1, %v2452_v10  ;;  %2339 = vmatpush3.bf16.msra.mxu0 %v2396_v17 }
 0xfdf   : > { %2340 = vmatprep.subr.bf16.mxu0 %v2452_v10 }
0x1099   : > { %v1435_v34 = vpop.f32.mrf.mxu0 }
0x109b   : > { %v2319_v37 = vpop.f32.mrf.mxu0 }
0x109d   : > { %v1602_v38 = vpop.f32.mrf.mxu0 }
0x109e   : > { %1607 = vrot.lane.b32.xlu1 %v1602_v38, %s2459_s21 }
0x109f   : > { %v2329_v39 = vpop.f32.mrf.mxu0 }
0x1110   : > { %v1608_v40 = vpop.permute.xlu1 %1607 }
0x1111   : > { %v1610_v41 = vsel %vm572_vm2, %v1435_v34, %v1608_v40 }
0x1112   : > { %v1611_v42 = vpack.c.bf16 %v1610_v41, %v1610_v41 }
0x1114   : > { %2335 = vmatmul.mubr.msk.bf16.vlgmr.msra.gmra.mxu1 %vm475_vm0, %v1611_v42 }
0x1115   : > { %2354 = vmatprep.mubr.msk.bf16.mxu1 %vm2453_vm1, %v2452_v10  ;;  %2347 = vmatpush3.bf16.msra.mxu1 %v2398_v5 }
0x1116   : > { %2348 = vmatprep.subr.bf16.mxu1 %v2452_v10 }
0x1119   : > { %2349 = vmatpush3.bf16.msra.mxu1 %v2399_v19 }
0x111a   : > { %2350 = vmatprep.subr.bf16.mxu1 %v2452_v10 }
0x111d   : > { %2351 = vmatpush3.bf16.msra.mxu1 %v2400_v6  ;;  %v1899_v6 = vrot.slane %v2768_v43, %v1199_v45 }
0x111e   : > { %2352 = vmatprep.subr.bf16.mxu1 %v2452_v10 }
0x1121   : > { %2353 = vmatpush3.bf16.msra.mxu1 %v2401_v7 }
0x11d4   : > { %v1670_v47 = vpop.f32.mrf.mxu1 }
0x11d5   : > { %v1671_v48 = vadd.f32 %v1670_v47, %v1620_v46 }
0x11d6   : > { %v2336_v49 = vpop.f32.mrf.mxu1 }
0x11d7   : > { %v1676_v50 = vadd.f32 %v1671_v48, %v2713_v51  ;;  %v2397_v51 = vld [vmem:[%s2857_s8 + $0x10] sm:$0xff]  }
0x11d8   : > { %v1673_v52 = vpop.f32.mrf.mxu1  ;;  %2341 = vmatpush3.bf16.msra.mxu0 %v2397_v51 }
0x11d9   : > { %v1677_v53 = vsel %vm475_vm0, %v1676_v50, 0.0  ;;  %2358 = vmatprep.subr.bf16.mxu0 %v2452_v10 }
0x11da   : > { %1678 = vadd.xlane.f32.xlu0 %v1677_v53  ;;  %v2337_v54 = vpop.f32.mrf.mxu1  ;;  %v1809_v53 = vrot.slane %v2768_v43, %v2690_v23 }
0x1263   : > { %v1679_v55 = vpop.xlane.xlu0 %1678 }
0x1264   : > { %v1680_v56 = vmul.f32 0.03125, %v1679_v55 }
0x1266   : > { %v1681_v11 = vsub.f32 %v1676_v50, %v1680_v56 }
0x1268   : > { %v1682_v57 = vmul.f32 %v1681_v11, %v1681_v11 }
0x126a   : > { %v1683_v58 = vsel %vm475_vm0, %v1682_v57, 0.0 }
0x126b   : > { %1684 = vadd.xlane.f32.xlu1 %v1683_v58 }
0x12f4   : > { %v1685_v59 = vpop.xlane.xlu1 %1684 }
0x12f5   : > { %v1686_v60 = vmul.f32 0.03125, %v1685_v59 }
0x12f7   : > { %v1687_v61 = vadd.f32 1e-12, %v1686_v60 }
0x12f9   : > { %2430 = vrsqrt.f32 %v1687_v61 }
0x1306   : > { %v2431_v63 = vpop.eup %2430 }
0x1307   : > { %v1689_v0 = vmul.f32 %v2431_v63, %v1681_v11  ;;  %v2402_v63 = vld [vmem:[%s2860_s11 + $0x8] sm:$0xff]  }
0x1309   : > { %v1694_v2 = vmul.f32 %v1693_v62, %v1689_v0  ;;  %v2403_v0 = vld [vmem:[%s2860_s11] sm:$0xff]  }
0x130b   : > { %v1699_v3 = vadd.f32 %v1698_v1, %v1694_v2 }
0x130d   : > { %v1700_v4 = vpack.c.bf16 %v1699_v3, %v1699_v3 }
0x130f   : > { %2343 = vmatmul.mubr.msk.bf16.vlgmr.msra.gmra.mxu0 %vm475_vm0, %v1700_v4  ;;  %v1894_v4 = vrot.slane %v2768_v43, %v2705_v44 }
0x1310   : > { %2362 = vmatprep.mubr.msk.bf16.mxu0 %vm2453_vm1, %v2452_v10  ;;  %2359 = vmatpush3.bf16.msra.mxu0 %v2402_v63 }
0x1311   : > { %2360 = vmatprep.subr.bf16.mxu0 %v2452_v10  ;;  %v1909_v10 = vrot.slane %v2572_v18, %v2658_v35 }
0x1314   : > { %2361 = vmatpush3.bf16.msra.mxu0 %v2403_v0 }
0x13cf   : > { %v1763_v9 = vpop.f32.mrf.mxu0 }
0x13d0   : > { %v1764_v12 = vadd.f32 %v2176_v8, %v1763_v9 }
0x13d1   : > { %v2344_v13 = vpop.f32.mrf.mxu0 }
0x13d2   : > { %v1770_v14 = vmul.f32 0.70710677, %v1764_v12  ;;  %v1769_v48 = vmul.f32 0.5, %v1764_v12 }
0x13d3   : > { %v1766_v20 = vpop.f32.mrf.mxu0 }
0x13d4   : > { %v1771_v21 = vand.u32 2147483647, %v1770_v14  ;;  %vm1791_vm6 = vcmp.ge.f32.partialorder %v1770_v14, 0.0 }
0x13d5   : > { %v2345_v36 = vpop.f32.mrf.mxu0 }
0x13d6   : > { %v1772_v22 = vmul.f32 0.3275911, %v1771_v21  ;;  %v1785_v26 = vsub.f32 0.0, %v1771_v21 }
0x13d8   : > { %v1773_v24 = vadd.f32 1.0, %v1772_v22  ;;  %v1786_v27 = vmul.f32 %v1785_v26, %v1771_v21 }
0x13da   : > { %2432 = vrcp.f32 %v1773_v24  ;;  %v1787_v30 = vmul.f32 1.442695, %v1786_v27 }
0x13dc   : > { %2434 = vpow2.f32 %v1787_v30 }
0x13e7   : > { %v2433_v28 = vpop.eup %2432 }
0x13e8   : > { %v1776_v29 = vmul.f32 1.0614054, %v2433_v28 }
0x13e9   : > { %v2435_v40 = vpop.eup %2434 }
0x13ea   : > { %v1777_v31 = vadd.f32 -1.4531521, %v1776_v29 }
0x13ec   : > { %v1778_v25 = vmul.f32 %v2433_v28, %v1777_v31 }
0x13ee   : > { %v1779_v32 = vadd.f32 1.4214138, %v1778_v25 }
0x13f0   : > { %v1780_v33 = vmul.f32 %v2433_v28, %v1779_v32 }
0x13f2   : > { %v1781_v34 = vadd.f32 -0.28449672, %v1780_v33 }
0x13f4   : > { %v1782_v37 = vmul.f32 %v2433_v28, %v1781_v34 }
0x13f6   : > { %v1783_v38 = vadd.f32 0.2548296, %v1782_v37 }
0x13f8   : > { %v1784_v39 = vmul.f32 %v2433_v28, %v1783_v38 }
0x13fa   : > { %v1789_v41 = vmul.f32 %v2435_v40, %v1784_v39 }
0x13fc   : > { %v1790_v42 = vsub.f32 1.0, %v1789_v41 }
0x13fe   : > { %v1792_v46 = vsub.f32 0.0, %v1790_v42 }
0x1400   : > { %v1793_v47 = vsel %vm1791_vm6, %v1790_v42, %v1792_v46 }
0x1401   : > { %v1794_v49 = vadd.f32 1.0, %v1793_v47 }
0x1403   : > { %v1795_v50 = vmul.f32 %v1794_v49, %v1769_v48 }
0x1405   : > { %v1796_v52 = vpack.c.bf16 %v1795_v50, %v1795_v50 }
0x1407   : > { %2355 = vmatmul.mubr.msk.bf16.vlgmr.msra.gmra.mxu1 %vm1134_vm5, %v1796_v52 }
0x14c7   : > { %v1871_v54 = vpop.f32.mrf.mxu1 }
0x14c8   : > { %v1872_v55 = vadd.f32 %v1871_v54, %v1809_v53 }
0x14c9   : > { %v2356_v56 = vpop.f32.mrf.mxu1 }
0x14ca   : > { %v1877_v11 = vadd.f32 %v1872_v55, %v1699_v3 }
0x14cb   : > { %v1874_v57 = vpop.f32.mrf.mxu1 }
0x14cc   : > { %v1878_v58 = vsel %vm475_vm0, %v1877_v11, 0.0 }
0x14cd   : > { %1879 = vadd.xlane.f32.xlu0 %v1878_v58  ;;  %v2357_v17 = vpop.f32.mrf.mxu1  ;;  %v2008_v58 = vrot.slane %v2572_v18, %v2690_v23 }
0x1556   : > { %v1880_v51 = vpop.xlane.xlu0 %1879 }
0x1557   : > { %v1881_v59 = vmul.f32 0.03125, %v1880_v51 }
0x1559   : > { %v1882_v60 = vsub.f32 %v1877_v11, %v1881_v59  ;;  %v2013_v59 = vrot.slane %v2572_v18, %v2705_v44 }
0x155b   : > { %v1883_v61 = vmul.f32 %v1882_v60, %v1882_v60 }
0x155d   : > { %v1884_v62 = vsel %vm475_vm0, %v1883_v61, 0.0  ;;  %v2016_v61 = vld [vmem:[%s465_s23 + $0x8] sm:$0xff] }
0x155e   : > { %1885 = vadd.xlane.f32.xlu0 %v1884_v62  ;;  %v2015_v62 = vld [vmem:[%s465_s23] sm:$0xff] }
0x15e7   : > { %v1886_v1 = vpop.xlane.xlu0 %1885 }
0x15e8   : > { %v1887_v2 = vmul.f32 0.03125, %v1886_v1 }
0x15ea   : > { %v1888_v3 = vadd.f32 1e-12, %v1887_v2 }
0x15ec   : > { %2436 = vrsqrt.f32 %v1888_v3  ;;  %v2028_v3 = vand.u32 127, %v490_v15 }
0x15f9   : > { %v2437_v5 = vpop.eup %2436 }
0x15fa   : > { %v1890_v19 = vmul.f32 %v2437_v5, %v1882_v60 }
0x15fc   : > { %v1895_v7 = vmul.f32 %v1894_v4, %v1890_v19  ;;  %v2031_v4 = vsub.s32 %v2028_v3, %v2564_v16 }
0x15fe   : > { %v1900_v8 = vadd.f32 %v1899_v6, %v1895_v7 }
0x1600   : > { %v1901_v9 = vpack.c.bf16 %v1900_v8, %v1900_v8 }
0x1602   : > { %2363 = vmatmul.mubr.msk.bf16.vlgmr.msra.gmra.mxu0 %vm475_vm0, %v1901_v9 }
0x16c2   : > { %v1959_v12 = vpop.f32.mrf.mxu0 }
0x16c3   : > { %v1960_v13 = vadd.f32 %v1959_v12, %v1909_v10 }
0x16c4   : > { %v2364_v14 = vpop.f32.mrf.mxu0 }
0x16c5   : > { %v1966_v20 = vmul.f32 0.70710677, %v1960_v13  ;;  %v1965_v46 = vmul.f32 0.5, %v1960_v13 }
0x16c6   : > { %v1962_v21 = vpop.f32.mrf.mxu0 }
0x16c7   : > { %v1967_v36 = vand.u32 2147483647, %v1966_v20  ;;  %vm1987_vm7 = vcmp.ge.f32.partialorder %v1966_v20, 0.0 }
0x16c8   : > { %v2365_v22 = vpop.f32.mrf.mxu0 }
0x16c9   : > { %v1968_v24 = vmul.f32 0.3275911, %v1967_v36  ;;  %v1981_v27 = vsub.f32 0.0, %v1967_v36 }
0x16cb   : > { %v1969_v26 = vadd.f32 1.0, %v1968_v24  ;;  %v1982_v45 = vmul.f32 %v1981_v27, %v1967_v36 }
0x16cd   : > { %2438 = vrcp.f32 %v1969_v26  ;;  %v1983_v28 = vmul.f32 1.442695, %v1982_v45 }
0x16cf   : > { %2440 = vpow2.f32 %v1983_v28 }
0x16da   : > { %v2439_v43 = vpop.eup %2438 }
0x16db   : > { %v1972_v29 = vmul.f32 1.0614054, %v2439_v43 }
0x16dc   : > { %v2441_v38 = vpop.eup %2440 }
0x16dd   : > { %v1973_v30 = vadd.f32 -1.4531521, %v1972_v29 }
0x16df   : > { %v1974_v31 = vmul.f32 %v2439_v43, %v1973_v30 }
0x16e1   : > { %v1975_v25 = vadd.f32 1.4214138, %v1974_v31 }
0x16e3   : > { %v1976_v35 = vmul.f32 %v2439_v43, %v1975_v25 }
0x16e5   : > { %v1977_v32 = vadd.f32 -0.28449672, %v1976_v35 }
0x16e7   : > { %v1978_v33 = vmul.f32 %v2439_v43, %v1977_v32 }
0x16e9   : > { %v1979_v34 = vadd.f32 0.2548296, %v1978_v33 }
0x16eb   : > { %v1980_v37 = vmul.f32 %v2439_v43, %v1979_v34 }
0x16ed   : > { %v1985_v39 = vmul.f32 %v2441_v38, %v1980_v37 }
0x16ef   : > { %v1986_v40 = vsub.f32 1.0, %v1985_v39 }
0x16f1   : > { %v1988_v41 = vsub.f32 0.0, %v1986_v40 }
0x16f3   : > { %v1989_v42 = vsel %vm1987_vm7, %v1986_v40, %v1988_v41 }
0x16f4   : > { %v1990_v47 = vadd.f32 1.0, %v1989_v42 }
0x16f6   : > { %v1991_v48 = vmul.f32 %v1990_v47, %v1965_v46 }
0x16f8   : > { %v1992_v49 = vsel %vm475_vm0, %v1991_v48, 0.0 }
0x16f9   : > { %1993 = vadd.xlane.f32.xlu0 %v1992_v49 }
0x1782   : > { %v1994_v50 = vpop.xlane.xlu0 %1993 }
0x1783   : > { %v1995_v52 = vmul.f32 0.03125, %v1994_v50 }
0x1785   : > { %v1996_v53 = vsub.f32 %v1991_v48, %v1995_v52 }
0x1787   : > { %v1997_v54 = vmul.f32 %v1996_v53, %v1996_v53 }
0x1789   : > { %v1998_v55 = vsel %vm475_vm0, %v1997_v54, 0.0 }
0x178a   : > { %1999 = vadd.xlane.f32.xlu1 %v1998_v55 }
0x1813   : > { %v2000_v56 = vpop.xlane.xlu1 %1999 }
0x1814   : > { %v2001_v11 = vmul.f32 0.03125, %v2000_v56 }
0x1816   : > { %v2002_v57 = vadd.f32 1e-12, %v2001_v11 }
0x1818   : > { %2442 = vrsqrt.f32 %v2002_v57 }
0x1825   : > { %v2443_v17 = vpop.eup %2442 }
0x1826   : > { %v2004_v51 = vmul.f32 %v2443_v17, %v1996_v53 }
0x1828   : > { %v2009_v60 = vmul.f32 %v2008_v58, %v2004_v51 }
0x182a   : > { %v2014_v63 = vadd.f32 %v2013_v59, %v2009_v60 }
0x182c   : > { %v2018_v0 = vmul.f32 %v2016_v61, %v2014_v63  ;;  %v2017_v1 = vmul.f32 %v2015_v62, %v2014_v63 }
0x182e   : > { %v2022_v2 = vsel %vm475_vm0, %v2018_v0, 0.0  ;;  %v2019_v23 = vsel %vm475_vm0, %v2017_v1, 0.0 }
0x182f   : > { %2023 = vadd.xlane.f32.xlu1 %v2022_v2  ;;  %2020 = vadd.xlane.f32.xlu0 %v2019_v23 }
0x18b8   : > { %v2024_v5 = vpop.xlane.xlu1 %2023  ;;  %v2021_v18 = vpop.xlane.xlu0 %2020 }
0x18b9   : > { %v2036_v44 = vrot.slane %v2024_v5, %v2031_v4  ;;  %v2032_v19 = vrot.slane %v2021_v18, %v2031_v4 }
0x18bb   : > { %v2038_v6 = vsel %vm2037_vm8, %v2036_v44, %v2032_v19 }
0x18bc   : > { %2041 = vst.msk [vmem:[%s469_s27] sm:$0x3] %vm2040_vm9, %v2038_v6 }
0x18bd PF: > { %s23_s25 = sadd.s32 1, %s2450_s25  }
0x18be   : > { %p20_p4 = scmp.ge.s32.totalorder %s23_s25, 4  }
0x18c0   :  { %22 = sbr.rel (!%p20_p4) target bundleno = 1 (0x1), region = 115 }

</bundles_post_ra>
